<compile_context>
chip_gen: v6e
topology: v6e:2x2x1
jax: 0.10.0
libtpu: 0.0.40
codegen_flags: <defaults>
</compile_context>

<pallas_src>
from functools import partial

import jax
import jax.numpy as jnp
from jax import lax
from jax.experimental import pallas as pl
from jax.experimental.pallas import tpu as pltpu

# ---- fixed filter constants (same values as the PyTorch nn.Parameters) ----
SOBEL_1 = ((-1., 0., 1.),
           (-2., 0., 2.),
           (-1., 0., 1.))
SOBEL_2 = (( 1.,  2.,  1.),
           ( 0.,  0.,  0.),
           (-1., -2., -1.))
LOG_5x5 = (( 0.,  0., -1.,  0.,  0.),
           ( 0., -1., -2., -1.,  0.),
           (-1., -2., 16., -2., -1.),
           ( 0., -1., -2., -1.,  0.),
           ( 0.,  0., -1.,  0.,  0.))


# ------------------------- small helpers -------------------------

def _cdiv(a, b):
    return -(-a // b)


def _round_up(a, b):
    return _cdiv(a, b) * b


def _num_tensorcores():
    """v7x (and v4/v5p megacore) expose 2 TensorCores; v5e/v6e expose 1."""
    try:
        kind = jax.devices()[0].device_kind.lower()
    except Exception:
        return 2                      # conservative default (safe for v7x)
    if any(tag in kind for tag in ("v7", "7x", "v4", "v5p")):
        return 2
    return 1


def _vmem_plan(n_cores):
    """(block budget, compiler vmem limit) derived from per-core VMEM capacity."""
    cap = 64 * 1024 * 1024
    try:
        cap = int(pltpu.get_tpu_info().vmem_capacity_bytes)
    except Exception:
        pass
    # If the reported capacity looks chip-level on a 2-TC chip, halve it.
    per_core = cap // 2 if (n_cores >= 2 and cap > 96 * 1024 * 1024) else cap
    budget = int(per_core * 0.42)     # ~54 MiB on v5e/v6e, ~27 MiB on v7x
    limit = int(per_core * 0.75)      # scoped-VMEM limit handed to the compiler
    return budget, limit


def _pick_lane_block(n, h, w, pad, live_tmps, budget, n_cores):
    """Channels (lanes) folded per grid step under the per-core VMEM budget."""
    hp, wp = h + 2 * pad, w + 2 * pad
    row, prow = _round_up(w, 8), _round_up(wp, 8)
    # f32 bytes per lane: double-buffered input + output blocks, the persistent
    # padded scratch, and the live in-kernel temporaries (shifted column views).
    per_lane = 4 * (2 * h * row + 2 * h * row + hp * prow + live_tmps * hp * row)
    if n <= 128:
        return n                      # single full-extent lane block
    # TODO(synk): for very large H*W even one 128-lane block may exceed the
    # budget; that regime additionally needs halo-tiled blocking over H.
    max_fit = max(128, (min(budget // max(per_lane, 1), n) // 128) * 128)
    # >=2 grid steps per TensorCore (v7x has 2) when there are enough 128-lane
    # blocks; never shrink below one lane-dense 128-lane block.
    min_steps = min(2 * n_cores, _cdiv(n, 128))
    steps = max(_cdiv(n, max_fit), min_steps)
    return _round_up(_cdiv(n, steps), 128)


# ------------------------- Pallas kernels -------------------------

def _stage_padded(x_ref, xp_ref, pad):
    """Copy the (H, W, TN) block into the zero-haloed (H+2p, W+2p, TN) scratch."""
    h, w, _ = x_ref.shape
    hp, wp, tn = xp_ref.shape
    # The interior is fully overwritten every step; only the halo strips need to
    # be (re)zeroed.  Done every step so it stays correct under megacore
    # "parallel" splitting (each core has its own scratch, no first-touch init).
    row_z = jnp.zeros((pad, wp, tn), jnp.float32)
    col_z = jnp.zeros((hp, pad, tn), jnp.float32)
    xp_ref[0:pad, :, :] = row_z
    xp_ref[h + pad:hp, :, :] = row_z
    xp_ref[:, 0:pad, :] = col_z
    xp_ref[:, w + pad:wp, :] = col_z
    xp_ref[pad:pad + h, pad:pad + w, :] = x_ref[...].astype(jnp.float32)


def _sobel_kernel(x_ref, o_ref, xp_ref):
    """Depthwise 3x3 Sobel pair, |gx| + |gy|, on an (H, W, TN) lane-dense block."""
    h, w, _ = o_ref.shape
    _stage_padded(x_ref, xp_ref, pad=1)
    # Column (W / sublane) passes — the only shifted loads in the kernel.
    a = xp_ref[:, 0:w, :]            # kx = 0
    b = xp_ref[:, 1:1 + w, :]        # kx = 1
    c = xp_ref[:, 2:2 + w, :]        # kx = 2
    dx = c - a                       # [-1, 0, 1] along W
    sx = a + 2.0 * b + c             # [ 1, 2, 1] along W
    # Row (H) combines: slicing the leading dim is free (no lane/sublane moves).
    #   SOBEL_1 = [1,2,1]^T (x) [-1,0,1]      SOBEL_2 = [1,0,-1]^T (x) [1,2,1]
    gx = dx[0:h] + 2.0 * dx[1:1 + h] + dx[2:2 + h]
    gy = sx[0:h] - sx[2:2 + h]
    o_ref[...] = (jnp.abs(gx) + jnp.abs(gy)).astype(o_ref.dtype)


def _log_kernel(x_ref, o_ref, xp_ref):
    """Depthwise 5x5 LoG + (>0) threshold on an (H, W, TN) lane-dense block."""
    h, w, _ = o_ref.shape
    _stage_padded(x_ref, xp_ref, pad=2)
    # Five column-shifted views (one per kx) — the only sublane-shifted loads.
    c0 = xp_ref[:, 0:w, :]
    c1 = xp_ref[:, 1:1 + w, :]
    c2 = xp_ref[:, 2:2 + w, :]
    c3 = xp_ref[:, 3:3 + w, :]
    c4 = xp_ref[:, 4:4 + w, :]
    s13 = c1 + c3                    # kx = 1 and kx = 3 share the same ky weights
    # Grouped taps: +-1 taps tree-summed before one subtract; the four -2 taps
    # share a single multiply; the +16 center tap is the only other multiply.
    acc = (16.0 * c2[2:2 + h]
           - (c2[0:h] + c2[4:4 + h])
           - (s13[1:1 + h] + s13[3:3 + h])
           - (c0[2:2 + h] + c4[2:2 + h])
           - 2.0 * (c2[1:1 + h] + c2[3:3 + h] + s13[2:2 + h]))
    o_ref[...] = jnp.where(acc > 0, 1.0, 0.0).astype(o_ref.dtype)


# ------------------------- wrapper -------------------------

def _run_depthwise(kernel_fn, x_nchw, pad, live_tmps):
    """Depthwise conv (same fixed filter on every channel) via Pallas.

    x_nchw: (B, C, H, W). Returns (B, C, H, W) in the input dtype.
    """
    B, C, H, W = x_nchw.shape
    N = B * C
    dt = x_nchw.dtype

    # Lane-dense relayout: channels (B*C) into the lane dim, W into the sublane
    # dim.  Stencil taps become sublane / leading-dim shifts only, and the
    # kernel's HBM rows are N*4-byte contiguous.
    x_hwn = jnp.transpose(x_nchw.reshape(N, H, W), (1, 2, 0))     # (H, W, N)

    n_cores = _num_tensorcores()
    budget, vmem_limit = _vmem_plan(n_cores)
    tn = _pick_lane_block(N, H, W, pad, live_tmps, budget, n_cores)
    grid = (_cdiv(N, tn),)
    hp, wp = H + 2 * pad, W + 2 * pad

    out_hwn = pl.pallas_call(
        kernel_fn,
        out_shape=jax.ShapeDtypeStruct((H, W, N), dt),
        grid_spec=pltpu.PrefetchScalarGridSpec(
            num_scalar_prefetch=0,
            grid=grid,
            in_specs=[pl.BlockSpec((H, W, tn), lambda i: (0, 0, i))],
            out_specs=pl.BlockSpec((H, W, tn), lambda i: (0, 0, i)),
            scratch_shapes=[pltpu.VMEM((hp, wp, tn), jnp.float32)],
        ),
        compiler_params=pltpu.CompilerParams(
            dimension_semantics=("parallel",),
            allow_input_fusion=[True],        # hint: fold the relayout transpose
            vmem_limit_bytes=vmem_limit,
        ),
    )(x_hwn)

    return jnp.transpose(out_hwn, (2, 0, 1)).reshape(B, C, H, W)


@partial(jax.jit, static_argnames=("mode",))
def extract_forward(x_nchw, mode):
    """Pallas equivalent of Extract.forward (NCHW in / NCHW out)."""
    if mode == "sobel":
        # depthwise 3x3 Sobel pair (groups=4, identical per-channel filters)
        return _run_depthwise(_sobel_kernel, x_nchw, pad=1, live_tmps=4)
    elif mode == "loG":
        # c==1 and c==4 branches reduce to the same depthwise 5x5 LoG + threshold
        return _run_depthwise(_log_kernel, x_nchw, pad=2, live_tmps=6)
    else:
        raise ValueError(f"unknown mode: {mode}")


# ------------------------- reference (plain JAX) -------------------------

def _ref_forward(x_nchw, mode):
    if mode == "sobel":
        w1 = jnp.tile(jnp.asarray(SOBEL_1, jnp.float32)[None, None], (4, 1, 1, 1))
        w2 = jnp.tile(jnp.asarray(SOBEL_2, jnp.float32)[None, None], (4, 1, 1, 1))
        dn = lax.conv_dimension_numbers(x_nchw.shape, w1.shape, ("NCHW", "OIHW", "NCHW"))
        xd = lax.conv_general_dilated(x_nchw, w1, (1, 1), [(1, 1), (1, 1)],
                                      dimension_numbers=dn, feature_group_count=4)
        yd = lax.conv_general_dilated(x_nchw, w2, (1, 1), [(1, 1), (1, 1)],
                                      dimension_numbers=dn, feature_group_count=4)
        return jnp.abs(xd) + jnp.abs(yd)
    else:
        c = x_nchw.shape[1]
        w = jnp.tile(jnp.asarray(LOG_5x5, jnp.float32)[None, None], (c, 1, 1, 1))
        dn = lax.conv_dimension_numbers(x_nchw.shape, w.shape, ("NCHW", "OIHW", "NCHW"))
        f = lax.conv_general_dilated(x_nchw, w, (1, 1), [(2, 2), (2, 2)],
                                     dimension_numbers=dn, feature_group_count=c)
        return jnp.where(f > 0, 1.0, 0.0)


if __name__ == "__main__":
    key = jax.random.PRNGKey(0)
    x = jax.random.normal(key, (2, 4, 16, 16), dtype=jnp.float32)   # NCHW

    # sobel mode
    out_sobel = jax.block_until_ready(extract_forward(x, "sobel"))
    ref_sobel = _ref_forward(x, "sobel")
    assert out_sobel.shape == (2, 4, 16, 16)
    assert jnp.max(jnp.abs(out_sobel - ref_sobel)) < 1e-4

    # loG mode (c == 4 branch; depthwise 5x5 + threshold)
    out_log = jax.block_until_ready(extract_forward(x, "loG"))
    ref_log = _ref_forward(x, "loG")
    assert out_log.shape == (2, 4, 16, 16)
    assert jnp.max(jnp.abs(out_log - ref_log)) < 1e-4

    # loG mode with single-channel input (c == 1 branch)
    x1 = jax.random.normal(jax.random.PRNGKey(1), (2, 1, 16, 16), dtype=jnp.float32)
    out_log1 = jax.block_until_ready(extract_forward(x1, "loG"))
    assert jnp.max(jnp.abs(out_log1 - _ref_forward(x1, "loG"))) < 1e-4

    # non-divisible lane-block count: N = 160 -> one 128-lane block + partial 32
    x2 = jax.random.normal(jax.random.PRNGKey(2), (40, 4, 16, 16), dtype=jnp.float32)
    out_s2 = jax.block_until_ready(extract_forward(x2, "sobel"))
    assert jnp.max(jnp.abs(out_s2 - _ref_forward(x2, "sobel"))) < 1e-4

    print("KERNEL_OK")
</pallas_src>

<mosaic_0001>
module attributes {stable_mosaic.version = 11 : i64} {
  func.func @_sobel_kernel(%arg0: i32, %arg1: memref<16x16x8xf32, #tpu.memory_space<vmem>>, %arg2: memref<16x16x8xf32, #tpu.memory_space<vmem>>, %arg3: memref<18x18x8xf32, #tpu.memory_space<vmem>>) attributes {dimension_semantics = [#tpu.dimension_semantics<parallel>], iteration_bounds = array<i64: 1>, scalar_prefetch = 0 : i64, scratch_operands = 1 : i64, tpu.core_type = #tpu.core_type<tc>, window_params = [{transform_indices = @transform_0, window_bounds = array<i64: 16, 16, 8>}, {transform_indices = @transform_1, window_bounds = array<i64: 16, 16, 8>}]} {
    %cst = arith.constant 0.000000e+00 : f32
    %0 = vector.broadcast %cst : f32 to vector<1x18x8xf32>
    %cst_0 = arith.constant 0.000000e+00 : f32
    %1 = vector.broadcast %cst_0 : f32 to vector<18x1x8xf32>
    %c0 = arith.constant 0 : index
    %c0_1 = arith.constant 0 : index
    %c0_2 = arith.constant 0 : index
    %2 = vector.load %arg3[%c0, %c0_1, %c0_2] : memref<18x18x8xf32, #tpu.memory_space<vmem>>, vector<1x18x8xf32>
    tpu.vector_store %arg3[%c0, %c0_1, %c0_2], %0 {strides = array<i32>} : memref<18x18x8xf32, #tpu.memory_space<vmem>>, vector<1x18x8xf32>,
    %c17 = arith.constant 17 : index
    %c0_3 = arith.constant 0 : index
    %c0_4 = arith.constant 0 : index
    %3 = vector.load %arg3[%c17, %c0_3, %c0_4] : memref<18x18x8xf32, #tpu.memory_space<vmem>>, vector<1x18x8xf32>
    tpu.vector_store %arg3[%c17, %c0_3, %c0_4], %0 {strides = array<i32>} : memref<18x18x8xf32, #tpu.memory_space<vmem>>, vector<1x18x8xf32>,
    %c0_5 = arith.constant 0 : index
    %c0_6 = arith.constant 0 : index
    %c0_7 = arith.constant 0 : index
    %4 = vector.load %arg3[%c0_5, %c0_6, %c0_7] : memref<18x18x8xf32, #tpu.memory_space<vmem>>, vector<18x1x8xf32>
    tpu.vector_store %arg3[%c0_5, %c0_6, %c0_7], %1 {strides = array<i32>} : memref<18x18x8xf32, #tpu.memory_space<vmem>>, vector<18x1x8xf32>,
    %c0_8 = arith.constant 0 : index
    %c17_9 = arith.constant 17 : index
    %c0_10 = arith.constant 0 : index
    %5 = vector.load %arg3[%c0_8, %c17_9, %c0_10] : memref<18x18x8xf32, #tpu.memory_space<vmem>>, vector<18x1x8xf32>
    tpu.vector_store %arg3[%c0_8, %c17_9, %c0_10], %1 {strides = array<i32>} : memref<18x18x8xf32, #tpu.memory_space<vmem>>, vector<18x1x8xf32>,
    %c0_11 = arith.constant 0 : index
    %c0_12 = arith.constant 0 : index
    %c0_13 = arith.constant 0 : index
    %6 = vector.load %arg1[%c0_11, %c0_12, %c0_13] : memref<16x16x8xf32, #tpu.memory_space<vmem>>, vector<16x16x8xf32>
    %c1 = arith.constant 1 : index
    %c1_14 = arith.constant 1 : index
    %c0_15 = arith.constant 0 : index
    %7 = vector.load %arg3[%c1, %c1_14, %c0_15] : memref<18x18x8xf32, #tpu.memory_space<vmem>>, vector<16x16x8xf32>
    tpu.vector_store %arg3[%c1, %c1_14, %c0_15], %6 {strides = array<i32>} : memref<18x18x8xf32, #tpu.memory_space<vmem>>, vector<16x16x8xf32>,
    %c0_16 = arith.constant 0 : index
    %c0_17 = arith.constant 0 : index
    %c0_18 = arith.constant 0 : index
    %8 = vector.load %arg3[%c0_16, %c0_17, %c0_18] : memref<18x18x8xf32, #tpu.memory_space<vmem>>, vector<18x16x8xf32>
    %c0_19 = arith.constant 0 : index
    %c1_20 = arith.constant 1 : index
    %c0_21 = arith.constant 0 : index
    %9 = vector.load %arg3[%c0_19, %c1_20, %c0_21] : memref<18x18x8xf32, #tpu.memory_space<vmem>>, vector<18x16x8xf32>
    %c0_22 = arith.constant 0 : index
    %c2 = arith.constant 2 : index
    %c0_23 = arith.constant 0 : index
    %10 = vector.load %arg3[%c0_22, %c2, %c0_23] : memref<18x18x8xf32, #tpu.memory_space<vmem>>, vector<18x16x8xf32>
    %11 = arith.subf %10, %8 : vector<18x16x8xf32>
    %cst_24 = arith.constant 2.000000e+00 : f32
    %12 = vector.broadcast %cst_24 : f32 to vector<18x16x8xf32>
    %13 = arith.mulf %12, %9 : vector<18x16x8xf32>
    %14 = arith.addf %8, %13 : vector<18x16x8xf32>
    %15 = arith.addf %14, %10 : vector<18x16x8xf32>
    %16 = vector.extract_strided_slice %11 {offsets = [0, 0, 0], sizes = [16, 16, 8], strides = [1, 1, 1]} : vector<18x16x8xf32> to vector<16x16x8xf32>
    %17 = vector.extract_strided_slice %11 {offsets = [1, 0, 0], sizes = [16, 16, 8], strides = [1, 1, 1]} : vector<18x16x8xf32> to vector<16x16x8xf32>
    %cst_25 = arith.constant 2.000000e+00 : f32
    %18 = vector.broadcast %cst_25 : f32 to vector<16x16x8xf32>
    %19 = arith.mulf %18, %17 : vector<16x16x8xf32>
    %20 = arith.addf %16, %19 : vector<16x16x8xf32>
    %21 = vector.extract_strided_slice %11 {offsets = [2, 0, 0], sizes = [16, 16, 8], strides = [1, 1, 1]} : vector<18x16x8xf32> to vector<16x16x8xf32>
    %22 = arith.addf %20, %21 : vector<16x16x8xf32>
    %23 = vector.extract_strided_slice %15 {offsets = [0, 0, 0], sizes = [16, 16, 8], strides = [1, 1, 1]} : vector<18x16x8xf32> to vector<16x16x8xf32>
    %24 = vector.extract_strided_slice %15 {offsets = [2, 0, 0], sizes = [16, 16, 8], strides = [1, 1, 1]} : vector<18x16x8xf32> to vector<16x16x8xf32>
    %25 = arith.subf %23, %24 : vector<16x16x8xf32>
    %26 = math.absf %22 : vector<16x16x8xf32>
    %27 = math.absf %25 : vector<16x16x8xf32>
    %28 = arith.addf %26, %27 : vector<16x16x8xf32>
    %c0_26 = arith.constant 0 : index
    %c0_27 = arith.constant 0 : index
    %c0_28 = arith.constant 0 : index
    %29 = vector.load %arg2[%c0_26, %c0_27, %c0_28] : memref<16x16x8xf32, #tpu.memory_space<vmem>>, vector<16x16x8xf32>
    tpu.vector_store %arg2[%c0_26, %c0_27, %c0_28], %28 {strides = array<i32>} : memref<16x16x8xf32, #tpu.memory_space<vmem>>, vector<16x16x8xf32>,
    return
  }
  func.func @transform_0(%arg0: i32) -> (i32, i32, i32) {
    %c0_i32 = arith.constant 0 : i32
    %c0_i32_0 = arith.constant 0 : i32
    %c0_i32_1 = arith.constant 0 : i32
    return %c0_i32, %c0_i32_0, %arg0 : i32, i32, i32
  }
  func.func @transform_1(%arg0: i32) -> (i32, i32, i32) {
    %c0_i32 = arith.constant 0 : i32
    %c0_i32_0 = arith.constant 0 : i32
    %c0_i32_1 = arith.constant 0 : i32
    return %c0_i32, %c0_i32_0, %arg0 : i32, i32, i32
  }
}

</mosaic_0001>

<bundles_post_ra>
// kernel: extract_forward.2
= control target key start
LH: loop header
LB: loop body
LE: loop exit
PB: predicated region body
PF: predicated region fallthrough
CT: control target
= control target key end

     0   :  { %vm198_vm0 = vcmask 64512   ;;  %vm201_vm1 = vcmask 58368   ;;  %v853_v6 = vmov 0.0   ;;  %vm207_vm2 = vcmask 57344   ;;  %s2061_s0 = inlined_call_operand.vmem [shape: f32[8,16,16], index: 0, kind: input, shape index: {}]   ;;  %s2062_s1 = inlined_call_operand.vmem [shape: f32[16,16,8], index: 1, kind: output, shape index: {}]  }
   0x1   :  { %v8_v0 = vld [vmem:[%s2061_s0] sm:$0xff]  ;;  %v821_v1 = vld [vmem:[%s2061_s0 + $0x8] sm:$0xff]  ;;  %v822_v2 = vld [vmem:[%s2061_s0 + $0x10] sm:$0xff]  ;;  %199 = vst.msk [vmem:[#allocation2] sm:$0xff] %vm198_vm0, %v853_v6 }
   0x2   :  { %v823_v3 = vld [vmem:[%s2061_s0 + $0x18] sm:$0xff]  ;;  %v824_v4 = vld [vmem:[%s2061_s0 + $0x20] sm:$0xff]  ;;  %v825_v5 = vld [vmem:[%s2061_s0 + $0x28] sm:$0xff]  ;;  %200 = vst.msk [vmem:[#allocation2 + $0x8] sm:$0xff] %vm198_vm0, %v853_v6 }
   0x3   :  { %202 = vst.msk [vmem:[#allocation2 + $0x10] sm:$0x3] %vm201_vm1, %v853_v6  ;;  %206 = vst.msk [vmem:[#allocation2 + $0x1a8] sm:$0x3] %vm201_vm1, %v853_v6  ;;  %v826_v7 = vld [vmem:[%s2061_s0 + $0x30] sm:$0xff]  ;;  %v827_v8 = vld [vmem:[%s2061_s0 + $0x38] sm:$0xff] }
   0x4   :  { %204 = vst.msk [vmem:[#allocation2 + $0x198] sm:$0xff] %vm198_vm0, %v853_v6  ;;  %205 = vst.msk [vmem:[#allocation2 + $0x1a0] sm:$0xff] %vm198_vm0, %v853_v6  ;;  %v828_v9 = vld [vmem:[%s2061_s0 + $0x40] sm:$0xff]  ;;  %v829_v10 = vld [vmem:[%s2061_s0 + $0x48] sm:$0xff] }
   0x5   :  { %277 = vst.msk [vmem:[#allocation2 + $0x19] sm:$0xff] %vm198_vm0, %v8_v0  ;;  %278 = vst.msk [vmem:[#allocation2 + $0x21] sm:$0xff] %vm198_vm0, %v821_v1  ;;  %v830_v11 = vld [vmem:[%s2061_s0 + $0x50] sm:$0xff]  ;;  %v831_v12 = vld [vmem:[%s2061_s0 + $0x58] sm:$0xff] }
   0x6   :  { %279 = vst.msk [vmem:[#allocation2 + $0x31] sm:$0xff] %vm198_vm0, %v822_v2  ;;  %280 = vst.msk [vmem:[#allocation2 + $0x39] sm:$0xff] %vm198_vm0, %v823_v3  ;;  %v832_v13 = vld [vmem:[%s2061_s0 + $0x60] sm:$0xff]  ;;  %v833_v14 = vld [vmem:[%s2061_s0 + $0x68] sm:$0xff] }
   0x7   :  { %208 = vst.msk [vmem:[#allocation2] sm:$0x1] %vm207_vm2, %v853_v6  ;;  %209 = vst.msk [vmem:[#allocation2 + $0x18] sm:$0x1] %vm207_vm2, %v853_v6  ;;  %v834_v15 = vld [vmem:[%s2061_s0 + $0x70] sm:$0xff]  ;;  %v835_v16 = vld [vmem:[%s2061_s0 + $0x78] sm:$0xff] }
   0x8   :  { %210 = vst.msk [vmem:[#allocation2 + $0x30] sm:$0x1] %vm207_vm2, %v853_v6  ;;  %211 = vst.msk [vmem:[#allocation2 + $0x48] sm:$0x1] %vm207_vm2, %v853_v6  ;;  %v836_v17 = vld [vmem:[%s2061_s0 + $0x80] sm:$0xff]  ;;  %v837_v18 = vld [vmem:[%s2061_s0 + $0x88] sm:$0xff] }
   0x9   :  { %212 = vst.msk [vmem:[#allocation2 + $0x60] sm:$0x1] %vm207_vm2, %v853_v6  ;;  %213 = vst.msk [vmem:[#allocation2 + $0x78] sm:$0x1] %vm207_vm2, %v853_v6  ;;  %v838_v19 = vld [vmem:[%s2061_s0 + $0x90] sm:$0xff]  ;;  %v839_v20 = vld [vmem:[%s2061_s0 + $0x98] sm:$0xff] }
   0xa   :  { %214 = vst.msk [vmem:[#allocation2 + $0x90] sm:$0x1] %vm207_vm2, %v853_v6  ;;  %215 = vst.msk [vmem:[#allocation2 + $0xa8] sm:$0x1] %vm207_vm2, %v853_v6  ;;  %v840_v21 = vld [vmem:[%s2061_s0 + $0xa0] sm:$0xff]  ;;  %v841_v22 = vld [vmem:[%s2061_s0 + $0xa8] sm:$0xff] }
   0xb   :  { %216 = vst.msk [vmem:[#allocation2 + $0xc0] sm:$0x1] %vm207_vm2, %v853_v6  ;;  %217 = vst.msk [vmem:[#allocation2 + $0xd8] sm:$0x1] %vm207_vm2, %v853_v6  ;;  %v842_v23 = vld [vmem:[%s2061_s0 + $0xb0] sm:$0xff]  ;;  %v843_v24 = vld [vmem:[%s2061_s0 + $0xb8] sm:$0xff] }
   0xc   :  { %218 = vst.msk [vmem:[#allocation2 + $0xf0] sm:$0x1] %vm207_vm2, %v853_v6  ;;  %219 = vst.msk [vmem:[#allocation2 + $0x108] sm:$0x1] %vm207_vm2, %v853_v6  ;;  %v844_v25 = vld [vmem:[%s2061_s0 + $0xc0] sm:$0xff]  ;;  %v845_v26 = vld [vmem:[%s2061_s0 + $0xc8] sm:$0xff] }
   0xd   :  { %220 = vst.msk [vmem:[#allocation2 + $0x120] sm:$0x1] %vm207_vm2, %v853_v6  ;;  %221 = vst.msk [vmem:[#allocation2 + $0x138] sm:$0x1] %vm207_vm2, %v853_v6  ;;  %v846_v27 = vld [vmem:[%s2061_s0 + $0xd0] sm:$0xff]  ;;  %v847_v28 = vld [vmem:[%s2061_s0 + $0xd8] sm:$0xff] }
   0xe   :  { %222 = vst.msk [vmem:[#allocation2 + $0x150] sm:$0x1] %vm207_vm2, %v853_v6  ;;  %223 = vst.msk [vmem:[#allocation2 + $0x168] sm:$0x1] %vm207_vm2, %v853_v6  ;;  %v848_v29 = vld [vmem:[%s2061_s0 + $0xe0] sm:$0xff]  ;;  %v849_v30 = vld [vmem:[%s2061_s0 + $0xe8] sm:$0xff] }
   0xf   :  { %224 = vst.msk [vmem:[#allocation2 + $0x180] sm:$0x1] %vm207_vm2, %v853_v6  ;;  %225 = vst.msk [vmem:[#allocation2 + $0x198] sm:$0x1] %vm207_vm2, %v853_v6  ;;  %v850_v31 = vld [vmem:[%s2061_s0 + $0xf0] sm:$0xff]  ;;  %v851_v32 = vld [vmem:[%s2061_s0 + $0xf8] sm:$0xff] }
  0x10   :  { %226 = vst.msk [vmem:[#allocation2 + $0x11] sm:$0x1] %vm207_vm2, %v853_v6  ;;  %227 = vst.msk [vmem:[#allocation2 + $0x29] sm:$0x1] %vm207_vm2, %v853_v6  ;;  %v345_v33 = vld [vmem:[#allocation2 + $0x1] sm:$0xff]  ;;  %v346_v34 = vld [vmem:[#allocation2 + $0x9] sm:$0xff] }
  0x11   :  { %228 = vst.msk [vmem:[#allocation2 + $0x41] sm:$0x1] %vm207_vm2, %v853_v6  ;;  %229 = vst.msk [vmem:[#allocation2 + $0x59] sm:$0x1] %vm207_vm2, %v853_v6  ;;  %v347_v35 = vld [vmem:[#allocation2 + $0x19] sm:$0xff]  ;;  %v1034_v37 = vld [vmem:[#allocation2 + $0x8] sm:$0xff] }
  0x12   :  { %230 = vst.msk [vmem:[#allocation2 + $0x71] sm:$0x1] %vm207_vm2, %v853_v6  ;;  %231 = vst.msk [vmem:[#allocation2 + $0x89] sm:$0x1] %vm207_vm2, %v853_v6  ;;  %v1032_v36 = vld [vmem:[#allocation2] sm:$0xff]  ;;  %v453_v39 = vmul.f32 2.0, %v345_v33 }
  0x13   :  { %232 = vst.msk [vmem:[#allocation2 + $0xa1] sm:$0x1] %vm207_vm2, %v853_v6  ;;  %233 = vst.msk [vmem:[#allocation2 + $0xb9] sm:$0x1] %vm207_vm2, %v853_v6  ;;  %v348_v38 = vld [vmem:[#allocation2 + $0x21] sm:$0xff]  ;;  %v349_v40 = vld [vmem:[#allocation2 + $0x31] sm:$0xff] }
  0x14   :  { %234 = vst.msk [vmem:[#allocation2 + $0xd1] sm:$0x1] %vm207_vm2, %v853_v6  ;;  %235 = vst.msk [vmem:[#allocation2 + $0xe9] sm:$0x1] %vm207_vm2, %v853_v6  ;;  %v350_v41 = vld [vmem:[#allocation2 + $0x39] sm:$0xff]  ;;  %v454_v43 = vmul.f32 2.0, %v346_v34  ;;  %v1041_v60 = vadd.f32 %v453_v39, %v1032_v36 }
  0x15   :  { %236 = vst.msk [vmem:[#allocation2 + $0x101] sm:$0x1] %vm207_vm2, %v853_v6  ;;  %237 = vst.msk [vmem:[#allocation2 + $0x119] sm:$0x1] %vm207_vm2, %v853_v6  ;;  %v455_v47 = vmul.f32 2.0, %v347_v35  ;;  %v1036_v48 = vld [vmem:[#allocation2 + $0x18] sm:$0xff] }
  0x16   :  { %238 = vst.msk [vmem:[#allocation2 + $0x131] sm:$0x1] %vm207_vm2, %v853_v6  ;;  %239 = vst.msk [vmem:[#allocation2 + $0x149] sm:$0x1] %vm207_vm2, %v853_v6  ;;  %v456_v52 = vmul.f32 2.0, %v348_v38  ;;  %v1038_v53 = vld [vmem:[#allocation2 + $0x20] sm:$0xff] }
  0x17   :  { %240 = vst.msk [vmem:[#allocation2 + $0x161] sm:$0x1] %vm207_vm2, %v853_v6  ;;  %241 = vst.msk [vmem:[#allocation2 + $0x179] sm:$0x1] %vm207_vm2, %v853_v6  ;;  %v457_v57 = vmul.f32 2.0, %v349_v40  ;;  %v458_v58 = vmul.f32 2.0, %v350_v41 }
  0x18   :  { %242 = vst.msk [vmem:[#allocation2 + $0x191] sm:$0x1] %vm207_vm2, %v853_v6  ;;  %243 = vst.msk [vmem:[#allocation2 + $0x1a9] sm:$0x1] %vm207_vm2, %v853_v6  ;;  %v1043_v61 = vld [vmem:[#allocation2 + $0x30] sm:$0xff] }
  0x19   :  { %281 = vst.msk [vmem:[#allocation2 + $0x49] sm:$0xff] %vm198_vm0, %v824_v4  ;;  %282 = vst.msk [vmem:[#allocation2 + $0x51] sm:$0xff] %vm198_vm0, %v825_v5  ;;  %v1048_v4 = vadd.f32 %v454_v43, %v1034_v37  ;;  %v1050_v5 = vld [vmem:[#allocation2 + $0x38] sm:$0xff] }
  0x1a   :  { %283 = vst.msk [vmem:[#allocation2 + $0x61] sm:$0xff] %vm198_vm0, %v826_v7  ;;  %284 = vst.msk [vmem:[#allocation2 + $0x69] sm:$0xff] %vm198_vm0, %v827_v8  ;;  %v1092_v38 = vadd.f32 %v458_v58, %v1050_v5  ;;  %v1120_v58 = vld [vmem:[#allocation2 + $0xa] sm:$0xff] }
  0x1b   :  { %285 = vst.msk [vmem:[#allocation2 + $0x79] sm:$0xff] %vm198_vm0, %v828_v9  ;;  %286 = vst.msk [vmem:[#allocation2 + $0x81] sm:$0xff] %vm198_vm0, %v829_v10 }
  0x1c   :  { %287 = vst.msk [vmem:[#allocation2 + $0x91] sm:$0xff] %vm198_vm0, %v830_v11  ;;  %288 = vst.msk [vmem:[#allocation2 + $0x99] sm:$0xff] %vm198_vm0, %v831_v12  ;;  %v1059_v12 = vadd.f32 %v455_v47, %v1036_v48 }
  0x1d   :  { %289 = vst.msk [vmem:[#allocation2 + $0xa9] sm:$0xff] %vm198_vm0, %v832_v13  ;;  %290 = vst.msk [vmem:[#allocation2 + $0xb1] sm:$0xff] %vm198_vm0, %v833_v14 }
  0x1e   :  { %291 = vst.msk [vmem:[#allocation2 + $0xc1] sm:$0xff] %vm198_vm0, %v834_v15  ;;  %292 = vst.msk [vmem:[#allocation2 + $0xc9] sm:$0xff] %vm198_vm0, %v835_v16 }
  0x1f   :  { %293 = vst.msk [vmem:[#allocation2 + $0xd9] sm:$0xff] %vm198_vm0, %v836_v17  ;;  %294 = vst.msk [vmem:[#allocation2 + $0xe1] sm:$0xff] %vm198_vm0, %v837_v18 }
  0x20   :  { %295 = vst.msk [vmem:[#allocation2 + $0xf1] sm:$0xff] %vm198_vm0, %v838_v19  ;;  %296 = vst.msk [vmem:[#allocation2 + $0xf9] sm:$0xff] %vm198_vm0, %v839_v20  ;;  %v351_v42 = vld [vmem:[#allocation2 + $0x49] sm:$0xff]  ;;  %v352_v44 = vld [vmem:[#allocation2 + $0x51] sm:$0xff]  ;;  %v1070_v20 = vadd.f32 %v456_v52, %v1038_v53 }
  0x21   :  { %297 = vst.msk [vmem:[#allocation2 + $0x109] sm:$0xff] %vm198_vm0, %v840_v21  ;;  %298 = vst.msk [vmem:[#allocation2 + $0x111] sm:$0xff] %vm198_vm0, %v841_v22  ;;  %v353_v45 = vld [vmem:[#allocation2 + $0x61] sm:$0xff]  ;;  %v354_v46 = vld [vmem:[#allocation2 + $0x69] sm:$0xff]  ;;  %v459_v59 = vmul.f32 2.0, %v351_v42  ;;  %v460_v1 = vmul.f32 2.0, %v352_v44 }
  0x22   :  { %299 = vst.msk [vmem:[#allocation2 + $0x121] sm:$0xff] %vm198_vm0, %v842_v23  ;;  %300 = vst.msk [vmem:[#allocation2 + $0x129] sm:$0xff] %vm198_vm0, %v843_v24  ;;  %v355_v49 = vld [vmem:[#allocation2 + $0x79] sm:$0xff]  ;;  %v356_v50 = vld [vmem:[#allocation2 + $0x81] sm:$0xff]  ;;  %v461_v2 = vmul.f32 2.0, %v353_v45  ;;  %v1045_v3 = vmul.f32 2.0, %v354_v46 }
  0x23   :  { %301 = vst.msk [vmem:[#allocation2 + $0x139] sm:$0xff] %vm198_vm0, %v844_v25  ;;  %302 = vst.msk [vmem:[#allocation2 + $0x141] sm:$0xff] %vm198_vm0, %v845_v26  ;;  %v357_v51 = vld [vmem:[#allocation2 + $0x91] sm:$0xff]  ;;  %v358_v54 = vld [vmem:[#allocation2 + $0x99] sm:$0xff]  ;;  %v1052_v9 = vmul.f32 2.0, %v355_v49  ;;  %v1054_v10 = vmul.f32 2.0, %v356_v50 }
  0x24   :  { %303 = vst.msk [vmem:[#allocation2 + $0x151] sm:$0xff] %vm198_vm0, %v846_v27  ;;  %304 = vst.msk [vmem:[#allocation2 + $0x159] sm:$0xff] %vm198_vm0, %v847_v28  ;;  %v359_v55 = vld [vmem:[#allocation2 + $0xa9] sm:$0xff]  ;;  %v360_v56 = vld [vmem:[#allocation2 + $0xb1] sm:$0xff]  ;;  %v1056_v11 = vmul.f32 2.0, %v357_v51  ;;  %v1063_v17 = vmul.f32 2.0, %v358_v54  ;;  %v1081_v28 = vadd.f32 %v457_v57, %v1043_v61 }
  0x25   :  { %305 = vst.msk [vmem:[#allocation2 + $0x169] sm:$0xff] %vm198_vm0, %v848_v29  ;;  %306 = vst.msk [vmem:[#allocation2 + $0x171] sm:$0xff] %vm198_vm0, %v849_v30  ;;  %v361_v62 = vld [vmem:[#allocation2 + $0xc1] sm:$0xff]  ;;  %v362_v63 = vld [vmem:[#allocation2 + $0xc9] sm:$0xff]  ;;  %v1065_v18 = vmul.f32 2.0, %v359_v55  ;;  %v1067_v19 = vmul.f32 2.0, %v360_v56 }
  0x26   :  { %307 = vst.msk [vmem:[#allocation2 + $0x181] sm:$0xff] %vm198_vm0, %v850_v31  ;;  %308 = vst.msk [vmem:[#allocation2 + $0x189] sm:$0xff] %vm198_vm0, %v851_v32  ;;  %v363_v0 = vld [vmem:[#allocation2 + $0xd9] sm:$0xff]  ;;  %v364_v6 = vld [vmem:[#allocation2 + $0xe1] sm:$0xff]  ;;  %v1074_v25 = vmul.f32 2.0, %v361_v62  ;;  %v1076_v26 = vmul.f32 2.0, %v362_v63 }
  0x27   :  { %2170 = vst [vmem:[#allocation4_spill] sm:$0xff] %v1032_v36  ;;  %2171 = vst [vmem:[#allocation5_spill] sm:$0xff] %v1034_v37  ;;  %v365_v7 = vld [vmem:[#allocation2 + $0xf1] sm:$0xff]  ;;  %v366_v8 = vld [vmem:[#allocation2 + $0xf9] sm:$0xff]  ;;  %v1078_v27 = vmul.f32 2.0, %v363_v0  ;;  %v1085_v33 = vmul.f32 2.0, %v364_v6 }
  0x28   :  { %2172 = vst [vmem:[#allocation6_spill] sm:$0xff] %v1041_v60  ;;  %2173 = vst [vmem:[#allocation7_spill] sm:$0xff] %v1048_v4  ;;  %v1061_v13 = vld [vmem:[#allocation2 + $0x48] sm:$0xff]  ;;  %v368_v15 = vld [vmem:[#allocation2 + $0x111] sm:$0xff]  ;;  %v1087_v34 = vmul.f32 2.0, %v365_v7  ;;  %v1089_v35 = vmul.f32 2.0, %v366_v8 }
  0x29   :  { %2174 = vst [vmem:[#allocation8_spill] sm:$0xff] %v1059_v12  ;;  %v367_v14 = vld [vmem:[#allocation2 + $0x109] sm:$0xff]  ;;  %v369_v16 = vld [vmem:[#allocation2 + $0x121] sm:$0xff]  ;;  %2175 = vst [vmem:[#allocation9_spill] sm:$0xff] %v1070_v20  ;;  %v1098_v44 = vmul.f32 2.0, %v368_v15  ;;  %v1103_v46 = vadd.f32 %v459_v59, %v1061_v13 }
  0x2a   :  { %v1072_v21 = vld [vmem:[#allocation2 + $0x50] sm:$0xff]  ;;  %v371_v23 = vld [vmem:[#allocation2 + $0x139] sm:$0xff]  ;;  %v372_v24 = vld [vmem:[#allocation2 + $0x141] sm:$0xff]  ;;  %2176 = vst [vmem:[#allocation10_spill] sm:$0xff] %v1081_v28  ;;  %v1096_v43 = vmul.f32 2.0, %v367_v14  ;;  %v1100_v45 = vmul.f32 2.0, %v369_v16 }
  0x2b   :  { %v370_v22 = vld [vmem:[#allocation2 + $0x129] sm:$0xff]  ;;  %v1083_v29 = vld [vmem:[#allocation2 + $0x60] sm:$0xff]  ;;  %v373_v30 = vld [vmem:[#allocation2 + $0x151] sm:$0xff]  ;;  %2177 = vst [vmem:[#allocation11_spill] sm:$0xff] %v1092_v38  ;;  %v1111_v54 = vmul.f32 2.0, %v371_v23  ;;  %v1113_v55 = vmul.f32 2.0, %v372_v24  ;;  %v1116_v56 = vadd.f32 %v460_v1, %v1072_v21 }
  0x2c   :  { %v374_v31 = vld [vmem:[#allocation2 + $0x159] sm:$0xff]  ;;  %v375_v32 = vld [vmem:[#allocation2 + $0x169] sm:$0xff]  ;;  %v376_v40 = vld [vmem:[#allocation2 + $0x171] sm:$0xff]  ;;  %2178 = vst [vmem:[#allocation12_spill] sm:$0xff] %v1103_v46  ;;  %v1109_v52 = vmul.f32 2.0, %v370_v22  ;;  %v1126_v63 = vmul.f32 2.0, %v373_v30  ;;  %v1133_v7 = vadd.f32 %v461_v2, %v1083_v29 }
  0x2d   :  { %v1094_v39 = vld [vmem:[#allocation2 + $0x68] sm:$0xff]  ;;  %v1105_v47 = vld [vmem:[#allocation2 + $0x78] sm:$0xff]  ;;  %2179 = vst [vmem:[#allocation13_spill] sm:$0xff] %v1116_v56  ;;  %v1118_v57 = vld [vmem:[#allocation2 + $0x80] sm:$0xff]  ;;  %v1128_v0 = vmul.f32 2.0, %v374_v31  ;;  %v1130_v6 = vmul.f32 2.0, %v375_v32 }
  0x2e   :  { %v377_v41 = vld [vmem:[#allocation2 + $0x181] sm:$0xff]  ;;  %v378_v42 = vld [vmem:[#allocation2 + $0x189] sm:$0xff]  ;;  %v379_v49 = vld [vmem:[#allocation2 + $0x199] sm:$0xff]  ;;  %2182 = vst [vmem:[#allocation16_spill] sm:$0xff] %v1133_v7  ;;  %v1141_v16 = vmul.f32 2.0, %v376_v40  ;;  %v1149_v24 = vadd.f32 %v1045_v3, %v1094_v39  ;;  %v1165_v3 = vadd.f32 %v1052_v9, %v1105_v47  ;;  %v1189_v40 = vadd.f32 %v1054_v10, %v1118_v57 }
  0x2f   :  { %v380_v50 = vld [vmem:[#allocation2 + $0x1a1] sm:$0xff]  ;;  %v321_v8 = vld [vmem:[#allocation2 + $0x90] sm:$0xff]  ;;  %v1143_v22 = vmul.f32 2.0, %v377_v41  ;;  %v1145_v23 = vmul.f32 2.0, %v378_v42  ;;  %v322_v30 = vld [vmem:[#allocation2 + $0x98] sm:$0xff]  ;;  %v1159_v41 = vmul.f32 2.0, %v379_v49 }
  0x30   :  { %v1107_v51 = vld [vmem:[#allocation2 + $0x2] sm:$0xff]  ;;  %v1122_v59 = vld [vmem:[#allocation2 + $0x1a] sm:$0xff]  ;;  %v1135_v1 = vld [vmem:[#allocation2 + $0x32] sm:$0xff]  ;;  %2186 = vst [vmem:[#allocation20_spill] sm:$0xff] %v1149_v24  ;;  %v1161_v42 = vmul.f32 2.0, %v380_v50 }
  0x31   :  { %2180 = vst [vmem:[#allocation14_spill] sm:$0xff] %v1122_v59  ;;  %v1124_v62 = vld [vmem:[#allocation2 + $0x22] sm:$0xff]  ;;  %2183 = vst [vmem:[#allocation17_spill] sm:$0xff] %v1135_v1  ;;  %v1137_v14 = vld [vmem:[#allocation2 + $0x3a] sm:$0xff]  ;;  %v1181_v50 = vsub.f32 %v1122_v59, %v1036_v48 }
  0x32   :  { %2181 = vst [vmem:[#allocation15_spill] sm:$0xff] %v1124_v62  ;;  %2184 = vst [vmem:[#allocation18_spill] sm:$0xff] %v1137_v14  ;;  %v1139_v15 = vld [vmem:[#allocation2 + $0x4a] sm:$0xff]  ;;  %v1151_v32 = vld [vmem:[#allocation2 + $0x52] sm:$0xff]  ;;  %v1185_v9 = vsub.f32 %v1124_v62, %v1038_v53  ;;  %v1205_v53 = vsub.f32 %v1135_v1, %v1043_v61  ;;  %v1209_v10 = vsub.f32 %v1137_v14, %v1050_v5 }
  0x33   :  { %2185 = vst [vmem:[#allocation19_spill] sm:$0xff] %v1139_v15  ;;  %v323_v2 = vld [vmem:[#allocation2 + $0xa8] sm:$0xff]  ;;  %v324_v31 = vld [vmem:[#allocation2 + $0xb0] sm:$0xff]  ;;  %2187 = vst [vmem:[#allocation21_spill] sm:$0xff] %v1151_v32  ;;  %v1213_v37 = vsub.f32 %v1139_v15, %v1061_v13  ;;  %v1232_v5 = vsub.f32 %v1151_v32, %v1072_v21 }
  0x34   :  { %v1153_v7 = vld [vmem:[#allocation2 + $0x62] sm:$0xff]  ;;  %v1155_v56 = vld [vmem:[#allocation2 + $0x6a] sm:$0xff]  ;;  %2190 = vst [vmem:[#allocation24_spill] sm:$0xff] %v1165_v3  ;;  %v1169_v38 = vld [vmem:[#allocation2 + $0xd8] sm:$0xff] }
  0x35   :  { %2188 = vst [vmem:[#allocation22_spill] sm:$0xff] %v1153_v7  ;;  %2189 = vst [vmem:[#allocation23_spill] sm:$0xff] %v1155_v56  ;;  %v325_v24 = vld [vmem:[#allocation2 + $0xc0] sm:$0xff]  ;;  %v1167_v46 = vld [vmem:[#allocation2 + $0xc8] sm:$0xff]  ;;  %v1240_v13 = vsub.f32 %v1155_v56, %v1094_v39 }
  0x36   :  { %v1171_v28 = vld [vmem:[#allocation2 + $0x7a] sm:$0xff]  ;;  %v1173_v20 = vld [vmem:[#allocation2 + $0x82] sm:$0xff]  ;;  %v1175_v12 = vld [vmem:[#allocation2 + $0x92] sm:$0xff]  ;;  %2193 = vst [vmem:[#allocation27_spill] sm:$0xff] %v1181_v50 }
  0x37   :  { %2191 = vst [vmem:[#allocation25_spill] sm:$0xff] %v1173_v20  ;;  %2192 = vst [vmem:[#allocation26_spill] sm:$0xff] %v1175_v12  ;;  %v1191_v36 = vld [vmem:[#allocation2 + $0xe0] sm:$0xff]  ;;  %v1193_v3 = vld [vmem:[#allocation2 + $0xf0] sm:$0xff]  ;;  %v1266_v39 = vsub.f32 %v1175_v12, %v321_v8 }
  0x38   :  { %2194 = vst [vmem:[#allocation28_spill] sm:$0xff] %v1185_v9  ;;  %2195 = vst [vmem:[#allocation29_spill] sm:$0xff] %v1189_v40  ;;  %v1195_v4 = vld [vmem:[#allocation2 + $0xf8] sm:$0xff]  ;;  %v1199_v49 = vld [vmem:[#allocation2 + $0xaa] sm:$0xff]  ;;  %v1216_v9 = vadd.f32 %v1056_v11, %v321_v8  ;;  %v1236_v11 = vsub.f32 %v1153_v7, %v1083_v29  ;;  %v1259_v29 = vsub.f32 %v1171_v28, %v1105_v47 }
  0x39   :  { %v1197_v60 = vld [vmem:[#allocation2 + $0x9a] sm:$0xff]  ;;  %v1201_v48 = vld [vmem:[#allocation2 + $0xb2] sm:$0xff]  ;;  %2196 = vst [vmem:[#allocation30_spill] sm:$0xff] %v1205_v53  ;;  %2197 = vst [vmem:[#allocation31_spill] sm:$0xff] %v1209_v10 }
  0x3a   :  { %2198 = vst [vmem:[#allocation32_spill] sm:$0xff] %v1213_v37  ;;  %2199 = vst [vmem:[#allocation33_spill] sm:$0xff] %v1216_v9  ;;  %v1218_v50 = vld [vmem:[#allocation2 + $0x108] sm:$0xff]  ;;  %v1220_v40 = vld [vmem:[#allocation2 + $0x110] sm:$0xff]  ;;  %v1243_v37 = vadd.f32 %v1063_v17, %v322_v30  ;;  %v1263_v17 = vsub.f32 %v1173_v20, %v1118_v57  ;;  %v1278_v47 = vsub.f32 %v1197_v60, %v322_v30 }
  0x3b   :  { %v1222_v62 = vld [vmem:[#allocation2 + $0x120] sm:$0xff]  ;;  %v1226_v61 = vld [vmem:[#allocation2 + $0xca] sm:$0xff]  ;;  %2202 = vst [vmem:[#allocation36_spill] sm:$0xff] %v1232_v5  ;;  %2203 = vst [vmem:[#allocation37_spill] sm:$0xff] %v1236_v11  ;;  %v1281_v57 = vsub.f32 %v1199_v49, %v323_v2  ;;  %v1284_v8 = vsub.f32 %v1201_v48, %v324_v31 }
  0x3c   :  { %v1224_v59 = vld [vmem:[#allocation2 + $0xc2] sm:$0xff]  ;;  %2200 = vst [vmem:[#allocation34_spill] sm:$0xff] %v1226_v61  ;;  %v1228_v53 = vld [vmem:[#allocation2 + $0xda] sm:$0xff]  ;;  %2204 = vst [vmem:[#allocation38_spill] sm:$0xff] %v1240_v13  ;;  %v1269_v13 = vadd.f32 %v1065_v18, %v323_v2  ;;  %v1287_v18 = vadd.f32 %v1067_v19, %v324_v31  ;;  %v1300_v2 = vsub.f32 %v1226_v61, %v1167_v46 }
  0x3d   :  { %2201 = vst [vmem:[#allocation35_spill] sm:$0xff] %v1228_v53  ;;  %2205 = vst [vmem:[#allocation39_spill] sm:$0xff] %v1243_v37  ;;  %v1245_v10 = vld [vmem:[#allocation2 + $0x128] sm:$0xff]  ;;  %v1247_v9 = vld [vmem:[#allocation2 + $0x138] sm:$0xff]  ;;  %v1296_v30 = vsub.f32 %v1224_v59, %v325_v24  ;;  %v1304_v19 = vsub.f32 %v1228_v53, %v1169_v38  ;;  %v1307_v31 = vadd.f32 %v1074_v25, %v325_v24 }
  0x3e   :  { %v1249_v15 = vld [vmem:[#allocation2 + $0x140] sm:$0xff]  ;;  %v1253_v21 = vld [vmem:[#allocation2 + $0xf2] sm:$0xff]  ;;  %2208 = vst [vmem:[#allocation42_spill] sm:$0xff] %v1259_v29  ;;  %2209 = vst [vmem:[#allocation43_spill] sm:$0xff] %v1263_v17  ;;  %v506_v25 = vadd.f32 %v1076_v26, %v1167_v46  ;;  %v507_v26 = vadd.f32 %v1078_v27, %v1169_v38 }
  0x3f   :  { %v1251_v14 = vld [vmem:[#allocation2 + $0xe2] sm:$0xff]  ;;  %2206 = vst [vmem:[#allocation40_spill] sm:$0xff] %v1253_v21  ;;  %v1255_v5 = vld [vmem:[#allocation2 + $0xfa] sm:$0xff]  ;;  %2210 = vst [vmem:[#allocation44_spill] sm:$0xff] %v1266_v39 }
  0x40   :  { %2207 = vst [vmem:[#allocation41_spill] sm:$0xff] %v1255_v5  ;;  %2211 = vst [vmem:[#allocation45_spill] sm:$0xff] %v1269_v13  ;;  %v337_v11 = vld [vmem:[#allocation2 + $0x150] sm:$0xff]  ;;  %v338_v37 = vld [vmem:[#allocation2 + $0x158] sm:$0xff] }
  0x41   :  { %v339_v56 = vld [vmem:[#allocation2 + $0x168] sm:$0xff]  ;;  %v1273_v32 = vld [vmem:[#allocation2 + $0x112] sm:$0xff]  ;;  %2212 = vst [vmem:[#allocation46_spill] sm:$0xff] %v1278_v47  ;;  %2213 = vst [vmem:[#allocation47_spill] sm:$0xff] %v1281_v57 }
  0x42   :  { %v1271_v7 = vld [vmem:[#allocation2 + $0x10a] sm:$0xff]  ;;  %v1275_v1 = vld [vmem:[#allocation2 + $0x122] sm:$0xff]  ;;  %2214 = vst [vmem:[#allocation48_spill] sm:$0xff] %v1284_v8  ;;  %v1291_v12 = vld [vmem:[#allocation2 + $0x13a] sm:$0xff] }
  0x43   :  { %v340_v39 = vld [vmem:[#allocation2 + $0x170] sm:$0xff]  ;;  %v341_v17 = vld [vmem:[#allocation2 + $0x180] sm:$0xff]  ;;  %v342_v29 = vld [vmem:[#allocation2 + $0x188] sm:$0xff]  ;;  %2216 = vst [vmem:[#allocation50_spill] sm:$0xff] %v1291_v12 }
  0x44   :  { %v1289_v13 = vld [vmem:[#allocation2 + $0x12a] sm:$0xff]  ;;  %v1293_v20 = vld [vmem:[#allocation2 + $0x142] sm:$0xff]  ;;  %2217 = vst [vmem:[#allocation51_spill] sm:$0xff] %v1296_v30  ;;  %2218 = vst [vmem:[#allocation52_spill] sm:$0xff] %v1300_v2  ;;  %v1317_v30 = vsub.f32 %v1251_v14, %v1191_v36  ;;  %v1321_v2 = vsub.f32 %v1253_v21, %v1193_v3 }
  0x45   :  { %2215 = vst [vmem:[#allocation49_spill] sm:$0xff] %v1289_v13  ;;  %2219 = vst [vmem:[#allocation53_spill] sm:$0xff] %v1304_v19  ;;  %v1309_v8 = vld [vmem:[#allocation2 + $0x152] sm:$0xff]  ;;  %v1311_v57 = vld [vmem:[#allocation2 + $0x15a] sm:$0xff]  ;;  %v1325_v19 = vsub.f32 %v1255_v5, %v1195_v4  ;;  %v1355_v21 = vsub.f32 %v1289_v13, %v1245_v10 }
  0x46   :  { %v1313_v47 = vld [vmem:[#allocation2 + $0x16a] sm:$0xff]  ;;  %2220 = vst [vmem:[#allocation54_spill] sm:$0xff] %v1317_v30  ;;  %2221 = vst [vmem:[#allocation55_spill] sm:$0xff] %v1321_v2  ;;  %v1329_v24 = vld [vmem:[#allocation2 + $0x172] sm:$0xff]  ;;  %v1337_v30 = vsub.f32 %v1271_v7, %v1218_v50  ;;  %v1341_v2 = vsub.f32 %v1273_v32, %v1220_v40  ;;  %v1368_v27 = vsub.f32 %v1309_v8, %v337_v11 }
  0x47   :  { %2222 = vst [vmem:[#allocation56_spill] sm:$0xff] %v1325_v19  ;;  %v1331_v53 = vld [vmem:[#allocation2 + $0x182] sm:$0xff]  ;;  %v1333_v61 = vld [vmem:[#allocation2 + $0x18a] sm:$0xff]  ;;  %v1345_v19 = vsub.f32 %v1275_v1, %v1222_v62  ;;  %v1349_v46 = vld [vmem:[#allocation2 + $0x19a] sm:$0xff]  ;;  %v1371_v38 = vsub.f32 %v1311_v57, %v338_v37  ;;  %v1374_v13 = vsub.f32 %v1313_v47, %v339_v56 }
  0x48   :  { %2223 = vst [vmem:[#allocation57_spill] sm:$0xff] %v1337_v30  ;;  %2224 = vst [vmem:[#allocation58_spill] sm:$0xff] %v1341_v2  ;;  %v1351_v5 = vld [vmem:[#allocation2 + $0x1a2] sm:$0xff]  ;;  %v1359_v30 = vsub.f32 %v1291_v12, %v1247_v9  ;;  %v1363_v2 = vsub.f32 %v1293_v20, %v1249_v15 }
  0x49   :  { %2225 = vst [vmem:[#allocation59_spill] sm:$0xff] %v1345_v19  ;;  %2226 = vst [vmem:[#allocation60_spill] sm:$0xff] %v1349_v46  ;;  %v508_v19 = vadd.f32 %v1085_v33, %v1191_v36  ;;  %v1380_v12 = vld [vmem:[#allocation2 + $0x1a0] sm:$0xff]  ;;  %v1386_v36 = vsub.f32 %v1331_v53, %v341_v17  ;;  %v1389_v33 = vsub.f32 %v1333_v61, %v342_v29 }
  0x4a   :  { %2227 = vst [vmem:[#allocation61_spill] sm:$0xff] %v1351_v5  ;;  %2228 = vst [vmem:[#allocation62_spill] sm:$0xff] %v1355_v21  ;;  %v509_v21 = vadd.f32 %v1087_v34, %v1193_v3  ;;  %v511_v3 = vadd.f32 %v1096_v43, %v1218_v50  ;;  %v517_v34 = vadd.f32 %v1126_v63, %v337_v11  ;;  %v2255_v11 = vld [vmem:[#allocation19_spill] sm:$0xff] }
  0x4b   :  { %2229 = vst [vmem:[#allocation63_spill] sm:$0xff] %v1359_v30  ;;  %2230 = vst [vmem:[#allocation64_spill] sm:$0xff] %v1363_v2  ;;  %v1378_v30 = vld [vmem:[#allocation2 + $0x198] sm:$0xff]  ;;  %v1383_v2 = vsub.f32 %v1329_v24, %v340_v39  ;;  %v519_v43 = vadd.f32 %v1130_v6, %v339_v56  ;;  %v2243_v56 = vld [vmem:[#allocation14_spill] sm:$0xff] }
  0x4c   :  { %2231 = vst [vmem:[#allocation65_spill] sm:$0xff] %v1368_v27  ;;  %2232 = vst [vmem:[#allocation66_spill] sm:$0xff] %v1371_v38  ;;  %v510_v38 = vadd.f32 %v1089_v35, %v1195_v4  ;;  %v515_v4 = vadd.f32 %v1111_v54, %v1247_v9  ;;  %v516_v35 = vadd.f32 %v1113_v55, %v1249_v15  ;;  %v2239_v55 = vld [vmem:[#allocation6_spill] sm:$0xff]  ;;  %v2246_v15 = vld [vmem:[#allocation15_spill] sm:$0xff] }
  0x4d   :  { %2233 = vst [vmem:[#allocation67_spill] sm:$0xff] %v1374_v13  ;;  %2234 = vst [vmem:[#allocation68_spill] sm:$0xff] %v1378_v30  ;;  %v518_v13 = vadd.f32 %v1128_v0, %v338_v37  ;;  %v524_v54 = vadd.f32 %v1161_v42, %v1380_v12  ;;  %v2241_v37 = vld [vmem:[#allocation7_spill] sm:$0xff]  ;;  %v2244_v0 = vld [vmem:[#allocation8_spill] sm:$0xff] }
  0x4e   :  { %2235 = vst [vmem:[#allocation69_spill] sm:$0xff] %v1380_v12  ;;  %2236 = vst [vmem:[#allocation70_spill] sm:$0xff] %v1383_v2  ;;  %v512_v2 = vadd.f32 %v1098_v44, %v1220_v40  ;;  %v520_v44 = vadd.f32 %v1141_v16, %v340_v39  ;;  %v521_v40 = vadd.f32 %v1143_v22, %v341_v17  ;;  %v2247_v16 = vld [vmem:[#allocation9_spill] sm:$0xff]  ;;  %v2252_v42 = vld [vmem:[#allocation18_spill] sm:$0xff] }
  0x4f   :  { %2237 = vst [vmem:[#allocation71_spill] sm:$0xff] %v1386_v36  ;;  %2238 = vst [vmem:[#allocation72_spill] sm:$0xff] %v1389_v33  ;;  %v513_v36 = vadd.f32 %v1100_v45, %v1222_v62  ;;  %v514_v33 = vadd.f32 %v1109_v52, %v1245_v10  ;;  %v522_v45 = vadd.f32 %v1145_v23, %v342_v29  ;;  %v2249_v23 = vld [vmem:[#allocation17_spill] sm:$0xff]  ;;  %v2253_v9 = vld [vmem:[#allocation11_spill] sm:$0xff] }
  0x50   :  { %v523_v52 = vadd.f32 %v1159_v41, %v1378_v30  ;;  %v1421_v62 = vadd.f32 %v2239_v55, %v1107_v51  ;;  %v1425_v63 = vadd.f32 %v2241_v37, %v1120_v58  ;;  %v1429_v6 = vadd.f32 %v2244_v0, %v2243_v56  ;;  %v2250_v41 = vld [vmem:[#allocation10_spill] sm:$0xff]  ;;  %v2256_v29 = vld [vmem:[#allocation12_spill] sm:$0xff]  ;;  %v2258_v39 = vld [vmem:[#allocation21_spill] sm:$0xff] }
  0x51   :  { %v1433_v22 = vadd.f32 %v2247_v16, %v2246_v15  ;;  %v1437_v50 = vadd.f32 %v2250_v41, %v2249_v23  ;;  %v1441_v10 = vadd.f32 %v2253_v9, %v2252_v42  ;;  %v1445_v17 = vadd.f32 %v2256_v29, %v2255_v11  ;;  %v2259_v55 = vld [vmem:[#allocation13_spill] sm:$0xff]  ;;  %v2261_v56 = vld [vmem:[#allocation22_spill] sm:$0xff]  ;;  %v2262_v0 = vld [vmem:[#allocation16_spill] sm:$0xff] }
  0x52   :  { %2240 = vst [vmem:[#allocation6_spill] sm:$0xff] %v1421_v62  ;;  %2242 = vst [vmem:[#allocation7_spill] sm:$0xff] %v1425_v63  ;;  %v1449_v37 = vadd.f32 %v2259_v55, %v2258_v39  ;;  %v1453_v15 = vadd.f32 %v2262_v0, %v2261_v56  ;;  %v2264_v16 = vld [vmem:[#allocation23_spill] sm:$0xff]  ;;  %v2267_v41 = vld [vmem:[#allocation24_spill] sm:$0xff] }
  0x53   :  { %2245 = vst [vmem:[#allocation14_spill] sm:$0xff] %v1429_v6  ;;  %2248 = vst [vmem:[#allocation8_spill] sm:$0xff] %v1433_v22  ;;  %v2265_v22 = vld [vmem:[#allocation20_spill] sm:$0xff]  ;;  %v1461_v42 = vadd.f32 %v2267_v41, %v1171_v28  ;;  %v2269_v9 = vld [vmem:[#allocation25_spill] sm:$0xff]  ;;  %v1481_v28 = vadd.f32 %v1287_v18, %v1201_v48  ;;  %v1503_v48 = vadd.f32 %v511_v3, %v1271_v7 }
  0x54   :  { %2251 = vst [vmem:[#allocation15_spill] sm:$0xff] %v1437_v50  ;;  %2254 = vst [vmem:[#allocation9_spill] sm:$0xff] %v1441_v10  ;;  %v1457_v23 = vadd.f32 %v2265_v22, %v2264_v16  ;;  %v2270_v6 = vld [vmem:[#allocation29_spill] sm:$0xff]  ;;  %v2272_v29 = vld [vmem:[#allocation26_spill] sm:$0xff]  ;;  %v1509_v18 = vadd.f32 %v513_v36, %v1275_v1  ;;  %v1524_v7 = vadd.f32 %v518_v13, %v1311_v57 }
  0x55   :  { %2257 = vst [vmem:[#allocation17_spill] sm:$0xff] %v1445_v17  ;;  %2260 = vst [vmem:[#allocation10_spill] sm:$0xff] %v1449_v37  ;;  %v1465_v11 = vadd.f32 %v2270_v6, %v2269_v9  ;;  %v2273_v17 = vld [vmem:[#allocation33_spill] sm:$0xff]  ;;  %v2275_v55 = vld [vmem:[#allocation39_spill] sm:$0xff]  ;;  %v1485_v6 = vadd.f32 %v1307_v31, %v1224_v59  ;;  %v1506_v59 = vadd.f32 %v512_v2, %v1273_v32  ;;  %v587_v37 = vmul.f32 2.0, %v1368_v27 }
  0x56   :  { %2263 = vst [vmem:[#allocation18_spill] sm:$0xff] %v1453_v15  ;;  %2266 = vst [vmem:[#allocation11_spill] sm:$0xff] %v1457_v23  ;;  %v1469_v39 = vadd.f32 %v2273_v17, %v2272_v29  ;;  %v1473_v56 = vadd.f32 %v2275_v55, %v1197_v60  ;;  %v2277_v0 = vld [vmem:[#allocation45_spill] sm:$0xff]  ;;  %v2281_v16 = vld [vmem:[#allocation34_spill] sm:$0xff]  ;;  %v1494_v60 = vadd.f32 %v508_v19, %v1251_v14 }
  0x57   :  { %2268 = vst [vmem:[#allocation19_spill] sm:$0xff] %v1461_v42  ;;  %2271 = vst [vmem:[#allocation12_spill] sm:$0xff] %v1465_v11  ;;  %v1477_v22 = vadd.f32 %v2277_v0, %v1199_v49  ;;  %v1488_v41 = vadd.f32 %v506_v25, %v2281_v16  ;;  %v2283_v17 = vld [vmem:[#allocation35_spill] sm:$0xff]  ;;  %v2286_v29 = vld [vmem:[#allocation40_spill] sm:$0xff]  ;;  %v1527_v32 = vadd.f32 %v519_v43, %v1313_v47 }
  0x58   :  { %2274 = vst [vmem:[#allocation21_spill] sm:$0xff] %v1469_v39  ;;  %2276 = vst [vmem:[#allocation13_spill] sm:$0xff] %v1473_v56  ;;  %v1491_v9 = vadd.f32 %v507_v26, %v2283_v17  ;;  %v1497_v49 = vadd.f32 %v509_v21, %v2286_v29  ;;  %v2288_v55 = vld [vmem:[#allocation41_spill] sm:$0xff]  ;;  %v2295_v14 = vld [vmem:[#allocation50_spill] sm:$0xff]  ;;  %v1518_v21 = vadd.f32 %v516_v35, %v1293_v20 }
  0x59   :  { %2278 = vst [vmem:[#allocation22_spill] sm:$0xff] %v1477_v22  ;;  %2279 = vst [vmem:[#allocation16_spill] sm:$0xff] %v1481_v28  ;;  %v1500_v0 = vadd.f32 %v510_v38, %v2288_v55  ;;  %v2293_v31 = vld [vmem:[#allocation49_spill] sm:$0xff]  ;;  %v1515_v19 = vadd.f32 %v515_v4, %v2295_v14  ;;  %v1521_v26 = vadd.f32 %v517_v34, %v1309_v8  ;;  %v2306_v13 = vld [vmem:[#allocation27_spill] sm:$0xff] }
  0x5a   :  { %2280 = vst [vmem:[#allocation23_spill] sm:$0xff] %v1485_v6  ;;  %2282 = vst [vmem:[#allocation20_spill] sm:$0xff] %v1488_v41  ;;  %v1512_v25 = vadd.f32 %v514_v33, %v2293_v31  ;;  %v1530_v1 = vadd.f32 %v520_v44, %v1329_v24  ;;  %v1533_v2 = vadd.f32 %v521_v40, %v1331_v53  ;;  %v561_v57 = vmul.f32 2.0, %v2306_v13  ;;  %v2307_v36 = vld [vmem:[#allocation28_spill] sm:$0xff]  ;;  %v2308_v33 = vld [vmem:[#allocation30_spill] sm:$0xff] }
  0x5b   :  { %2284 = vst [vmem:[#allocation24_spill] sm:$0xff] %v1491_v9  ;;  %2285 = vst [vmem:[#allocation25_spill] sm:$0xff] %v1494_v60  ;;  %v1536_v38 = vadd.f32 %v522_v45, %v1333_v61  ;;  %v1539_v20 = vadd.f32 %v523_v52, %v1349_v46  ;;  %v1542_v8 = vadd.f32 %v524_v54, %v1351_v5  ;;  %v562_v47 = vmul.f32 2.0, %v2307_v36  ;;  %v2309_v24 = vld [vmem:[#allocation31_spill] sm:$0xff]  ;;  %v2310_v4 = vld [vmem:[#allocation32_spill] sm:$0xff] }
  0x5c   :  { %2287 = vst [vmem:[#allocation29_spill] sm:$0xff] %v1497_v49  ;;  %2289 = vst [vmem:[#allocation26_spill] sm:$0xff] %v1500_v0  ;;  %v563_v34 = vmul.f32 2.0, %v2308_v33  ;;  %v564_v3 = vmul.f32 2.0, %v2309_v24  ;;  %v565_v53 = vmul.f32 2.0, %v2310_v4  ;;  %v2311_v35 = vld [vmem:[#allocation36_spill] sm:$0xff] }
  0x5d   :  { %2290 = vst [vmem:[#allocation33_spill] sm:$0xff] %v1503_v48  ;;  %2291 = vst [vmem:[#allocation39_spill] sm:$0xff] %v1506_v59  ;;  %v566_v43 = vmul.f32 2.0, %v2311_v35  ;;  %v2312_v61 = vld [vmem:[#allocation37_spill] sm:$0xff]  ;;  %v2313_v40 = vld [vmem:[#allocation38_spill] sm:$0xff] }
  0x5e   :  { %2292 = vst [vmem:[#allocation45_spill] sm:$0xff] %v1509_v18  ;;  %2294 = vst [vmem:[#allocation34_spill] sm:$0xff] %v1512_v25  ;;  %v567_v44 = vmul.f32 2.0, %v2312_v61  ;;  %v568_v45 = vmul.f32 2.0, %v2313_v40  ;;  %v2314_v52 = vld [vmem:[#allocation42_spill] sm:$0xff]  ;;  %v2315_v54 = vld [vmem:[#allocation43_spill] sm:$0xff]  ;;  %v595_v27 = vadd.f32 %v563_v34, %v2306_v13 }
  0x5f   :  { %2296 = vst [vmem:[#allocation35_spill] sm:$0xff] %v1515_v19  ;;  %2297 = vst [vmem:[#allocation40_spill] sm:$0xff] %v1518_v21  ;;  %v569_v16 = vmul.f32 2.0, %v2314_v52  ;;  %v570_v17 = vmul.f32 2.0, %v2315_v54  ;;  %v2316_v29 = vld [vmem:[#allocation44_spill] sm:$0xff]  ;;  %v2317_v31 = vld [vmem:[#allocation46_spill] sm:$0xff] }
  0x60   :  { %2298 = vst [vmem:[#allocation41_spill] sm:$0xff] %v1521_v26  ;;  %2299 = vst [vmem:[#allocation49_spill] sm:$0xff] %v1524_v7  ;;  %v571_v55 = vmul.f32 2.0, %v2316_v29  ;;  %v572_v14 = vmul.f32 2.0, %v2317_v31  ;;  %v2321_v7 = vld [vmem:[#allocation52_spill] sm:$0xff]  ;;  %v2322_v21 = vld [vmem:[#allocation53_spill] sm:$0xff] }
  0x61   :  { %2300 = vst [vmem:[#allocation50_spill] sm:$0xff] %v1527_v32  ;;  %2301 = vst [vmem:[#allocation73_spill] sm:$0xff] %v1530_v1  ;;  %v2320_v1 = vld [vmem:[#allocation51_spill] sm:$0xff]  ;;  %v576_v26 = vmul.f32 2.0, %v2321_v7  ;;  %v577_v19 = vmul.f32 2.0, %v2322_v21  ;;  %v2323_v25 = vld [vmem:[#allocation54_spill] sm:$0xff] }
  0x62   :  { %2302 = vst [vmem:[#allocation74_spill] sm:$0xff] %v1533_v2  ;;  %2303 = vst [vmem:[#allocation75_spill] sm:$0xff] %v1536_v38  ;;  %v2319_v38 = vld [vmem:[#allocation48_spill] sm:$0xff]  ;;  %v575_v32 = vmul.f32 2.0, %v2320_v1  ;;  %v578_v18 = vmul.f32 2.0, %v2323_v25  ;;  %v2324_v59 = vld [vmem:[#allocation55_spill] sm:$0xff]  ;;  %v601_v25 = vadd.f32 %v569_v16, %v2312_v61 }
  0x63   :  { %2304 = vst [vmem:[#allocation76_spill] sm:$0xff] %v1539_v20  ;;  %2305 = vst [vmem:[#allocation77_spill] sm:$0xff] %v1542_v8  ;;  %v2318_v8 = vld [vmem:[#allocation47_spill] sm:$0xff]  ;;  %v574_v2 = vmul.f32 2.0, %v2319_v38  ;;  %v579_v48 = vmul.f32 2.0, %v2324_v59  ;;  %v2325_v0 = vld [vmem:[#allocation56_spill] sm:$0xff]  ;;  %v608_v13 = vadd.f32 %v576_v26, %v2319_v38 }
  0x64   :  { %v573_v20 = vmul.f32 2.0, %v2318_v8  ;;  %v580_v49 = vmul.f32 2.0, %v2325_v0  ;;  %v2326_v60 = vld [vmem:[#allocation57_spill] sm:$0xff]  ;;  %v2327_v41 = vld [vmem:[#allocation58_spill] sm:$0xff]  ;;  %v2328_v28 = vld [vmem:[#allocation59_spill] sm:$0xff] }
  0x65   :  { %v581_v9 = vmul.f32 2.0, %v2326_v60  ;;  %v582_v6 = vmul.f32 2.0, %v2327_v41  ;;  %v583_v22 = vmul.f32 2.0, %v2328_v28  ;;  %v2329_v56 = vld [vmem:[#allocation62_spill] sm:$0xff]  ;;  %v2330_v11 = vld [vmem:[#allocation63_spill] sm:$0xff]  ;;  %v2331_v23 = vld [vmem:[#allocation64_spill] sm:$0xff] }
  0x66   :  { %v584_v39 = vmul.f32 2.0, %v2329_v56  ;;  %v585_v42 = vmul.f32 2.0, %v2330_v11  ;;  %v586_v15 = vmul.f32 2.0, %v2331_v23  ;;  %v2332_v63 = vld [vmem:[#allocation66_spill] sm:$0xff]  ;;  %v2333_v62 = vld [vmem:[#allocation67_spill] sm:$0xff]  ;;  %v2336_v60 = vld [vmem:[#allocation72_spill] sm:$0xff] }
  0x67   :  { %v588_v10 = vmul.f32 2.0, %v2332_v63  ;;  %v589_v50 = vmul.f32 2.0, %v2333_v62  ;;  %v2334_v12 = vld [vmem:[#allocation70_spill] sm:$0xff]  ;;  %v2335_v30 = vld [vmem:[#allocation71_spill] sm:$0xff]  ;;  %v592_v41 = vmul.f32 2.0, %v2336_v60  ;;  %v2337_v28 = vld [vmem:[#allocation4_spill] sm:$0xff]  ;;  %v596_v63 = vadd.f32 %v564_v3, %v2307_v36 }
  0x68   :  { %v590_v5 = vmul.f32 2.0, %v2334_v12  ;;  %v591_v46 = vmul.f32 2.0, %v2335_v30  ;;  %v2338_v0 = vsub.f32 %v1107_v51, %v2337_v28  ;;  %v2339_v11 = vld [vmem:[#allocation5_spill] sm:$0xff]  ;;  %v597_v62 = vadd.f32 %v565_v53, %v2308_v33  ;;  %v2341_v34 = vld [vmem:[#allocation54_spill] sm:$0xff]  ;;  %v2342_v53 = vld [vmem:[#allocation55_spill] sm:$0xff] }
  0x69   :  { %v2340_v59 = vsub.f32 %v1120_v58, %v2339_v11  ;;  %v598_v12 = vadd.f32 %v566_v43, %v2309_v24  ;;  %v599_v30 = vadd.f32 %v567_v44, %v2310_v4  ;;  %v600_v60 = vadd.f32 %v568_v45, %v2311_v35  ;;  %v2343_v44 = vld [vmem:[#allocation56_spill] sm:$0xff]  ;;  %v2344_v16 = vld [vmem:[#allocation57_spill] sm:$0xff]  ;;  %v2348_v38 = vld [vmem:[#allocation63_spill] sm:$0xff] }
  0x6a   :  { %v593_v56 = vadd.f32 %v561_v57, %v2338_v0  ;;  %v602_v51 = vadd.f32 %v570_v17, %v2313_v40  ;;  %v603_v28 = vadd.f32 %v571_v55, %v2314_v52  ;;  %v604_v58 = vadd.f32 %v572_v14, %v2315_v54  ;;  %v2345_v17 = vld [vmem:[#allocation58_spill] sm:$0xff]  ;;  %v2346_v55 = vld [vmem:[#allocation59_spill] sm:$0xff] }
  0x6b   :  { %v594_v23 = vadd.f32 %v562_v47, %v2340_v59  ;;  %v605_v11 = vadd.f32 %v573_v20, %v2316_v29  ;;  %v606_v0 = vadd.f32 %v574_v2, %v2317_v31  ;;  %v607_v59 = vadd.f32 %v575_v32, %v2318_v8  ;;  %v2347_v14 = vld [vmem:[#allocation62_spill] sm:$0xff] }
  0x6c   :  { %v609_v57 = vadd.f32 %v577_v19, %v2320_v1  ;;  %v610_v36 = vadd.f32 %v578_v18, %v2321_v7  ;;  %v611_v47 = vadd.f32 %v579_v48, %v2322_v21  ;;  %v612_v3 = vadd.f32 %v580_v49, %v2341_v34  ;;  %v2349_v1 = vld [vmem:[#allocation64_spill] sm:$0xff]  ;;  %v2350_v7 = vld [vmem:[#allocation65_spill] sm:$0xff]  ;;  %v2351_v21 = vld [vmem:[#allocation66_spill] sm:$0xff] }
  0x6d   :  { %v613_v43 = vadd.f32 %v581_v9, %v2342_v53  ;;  %v614_v45 = vadd.f32 %v582_v6, %v2343_v44  ;;  %v615_v20 = vadd.f32 %v583_v22, %v2344_v16  ;;  %v616_v2 = vadd.f32 %v584_v39, %v2345_v17  ;;  %v2352_v34 = vld [vmem:[#allocation67_spill] sm:$0xff]  ;;  %v2353_v53 = vld [vmem:[#allocation70_spill] sm:$0xff] }
  0x6e   :  { %v617_v32 = vadd.f32 %v585_v42, %v2346_v55  ;;  %v618_v26 = vadd.f32 %v586_v15, %v2347_v14  ;;  %v619_v19 = vadd.f32 %v587_v37, %v2348_v38  ;;  %v620_v18 = vadd.f32 %v588_v10, %v2349_v1 }
  0x6f   :  { %v621_v48 = vadd.f32 %v589_v50, %v2350_v7  ;;  %v622_v49 = vadd.f32 %v590_v5, %v2351_v21  ;;  %v623_v9 = vadd.f32 %v591_v46, %v2352_v34  ;;  %v624_v6 = vadd.f32 %v592_v41, %v2353_v53 }
  0x70   :  { %v1613_v22 = vadd.f32 %v593_v56, %v2308_v33  ;;  %v1616_v39 = vadd.f32 %v594_v23, %v2309_v24  ;;  %v1619_v15 = vadd.f32 %v595_v27, %v2310_v4  ;;  %v1622_v37 = vadd.f32 %v596_v63, %v2311_v35  ;;  %v2365_v4 = vld [vmem:[#allocation55_spill] sm:$0xff] }
  0x71   :  { %v1625_v50 = vadd.f32 %v597_v62, %v2312_v61  ;;  %v1628_v5 = vadd.f32 %v598_v12, %v2313_v40  ;;  %v1631_v46 = vadd.f32 %v599_v30, %v2314_v52  ;;  %v1634_v10 = vadd.f32 %v600_v60, %v2315_v54  ;;  %v2357_v62 = vld [vmem:[#allocation48_spill] sm:$0xff]  ;;  %v2359_v12 = vld [vmem:[#allocation51_spill] sm:$0xff]  ;;  %v2362_v60 = vld [vmem:[#allocation53_spill] sm:$0xff] }
  0x72   :  { %v1637_v23 = vadd.f32 %v601_v25, %v2316_v29  ;;  %v1640_v27 = vadd.f32 %v602_v51, %v2317_v31  ;;  %v1643_v63 = vadd.f32 %v603_v28, %v2318_v8  ;;  %v1646_v42 = vadd.f32 %v604_v58, %v2357_v62  ;;  %v2360_v30 = vld [vmem:[#allocation52_spill] sm:$0xff]  ;;  %v2364_v25 = vld [vmem:[#allocation54_spill] sm:$0xff] }
  0x73   :  { %2354 = vst [vmem:[#allocation27_spill] sm:$0xff] %v1625_v50  ;;  %2355 = vst [vmem:[#allocation28_spill] sm:$0xff] %v1634_v10  ;;  %v1649_v56 = vadd.f32 %v605_v11, %v2359_v12  ;;  %v1652_v41 = vadd.f32 %v606_v0, %v2360_v30  ;;  %v1655_v33 = vadd.f32 %v607_v59, %v2362_v60  ;;  %v2371_v0 = vld [vmem:[#allocation71_spill] sm:$0xff]  ;;  %v2391_v62 = vld [vmem:[#allocation12_spill] sm:$0xff]  ;;  %v689_v12 = vand.u32 2147483647, %v1613_v22 }
  0x74   :  { %2356 = vst [vmem:[#allocation30_spill] sm:$0xff] %v1643_v63  ;;  %2358 = vst [vmem:[#allocation31_spill] sm:$0xff] %v1646_v42  ;;  %v1658_v24 = vadd.f32 %v608_v13, %v2364_v25  ;;  %v1661_v35 = vadd.f32 %v609_v57, %v2365_v4  ;;  %v1664_v8 = vadd.f32 %v610_v36, %v2343_v44  ;;  %v2374_v57 = vld [vmem:[#allocation68_spill] sm:$0xff]  ;;  %v2381_v44 = vld [vmem:[#allocation6_spill] sm:$0xff]  ;;  %v691_v60 = vand.u32 2147483647, %v1619_v15 }
  0x75   :  { %2361 = vst [vmem:[#allocation32_spill] sm:$0xff] %v1652_v41  ;;  %2363 = vst [vmem:[#allocation36_spill] sm:$0xff] %v1655_v33  ;;  %v1667_v61 = vadd.f32 %v611_v47, %v2344_v16  ;;  %v1670_v40 = vadd.f32 %v612_v3, %v2345_v17  ;;  %v1673_v52 = vadd.f32 %v613_v43, %v2346_v55  ;;  %v2376_v47 = vld [vmem:[#allocation61_spill] sm:$0xff]  ;;  %v2383_v16 = vld [vmem:[#allocation7_spill] sm:$0xff] }
  0x76   :  { %2366 = vst [vmem:[#allocation37_spill] sm:$0xff] %v1661_v35  ;;  %2367 = vst [vmem:[#allocation38_spill] sm:$0xff] %v1664_v8  ;;  %v1676_v54 = vadd.f32 %v614_v45, %v2347_v14  ;;  %v1679_v29 = vadd.f32 %v615_v20, %v2348_v38  ;;  %v1682_v31 = vadd.f32 %v616_v2, %v2349_v1  ;;  %v2372_v38 = vld [vmem:[#allocation72_spill] sm:$0xff]  ;;  %v2382_v45 = vld [vmem:[#allocation9_spill] sm:$0xff] }
  0x77   :  { %2368 = vst [vmem:[#allocation42_spill] sm:$0xff] %v1670_v40  ;;  %2369 = vst [vmem:[#allocation43_spill] sm:$0xff] %v1673_v52  ;;  %v1685_v51 = vadd.f32 %v617_v32, %v2350_v7  ;;  %v1688_v28 = vadd.f32 %v618_v26, %v2351_v21  ;;  %v1691_v58 = vadd.f32 %v619_v19, %v2352_v34  ;;  %v2373_v1 = vld [vmem:[#allocation60_spill] sm:$0xff]  ;;  %v2377_v21 = vld [vmem:[#allocation69_spill] sm:$0xff] }
  0x78   :  { %2370 = vst [vmem:[#allocation44_spill] sm:$0xff] %v1679_v29  ;;  %v1694_v11 = vadd.f32 %v620_v18, %v2353_v53  ;;  %v1697_v59 = vadd.f32 %v621_v48, %v2371_v0  ;;  %v1700_v13 = vadd.f32 %v622_v49, %v2372_v38  ;;  %v2375_v36 = vsub.f32 %v2373_v1, %v2374_v57  ;;  %v2380_v34 = vld [vmem:[#allocation15_spill] sm:$0xff]  ;;  %v2384_v17 = vld [vmem:[#allocation17_spill] sm:$0xff]  ;;  %v2385_v2 = vld [vmem:[#allocation14_spill] sm:$0xff] }
  0x79   :  { %v2378_v3 = vsub.f32 %v2376_v47, %v2377_v21  ;;  %v657_v53 = vsub.f32 %v2381_v44, %v2380_v34  ;;  %v2386_v32 = vld [vmem:[#allocation10_spill] sm:$0xff]  ;;  %v2387_v14 = vld [vmem:[#allocation8_spill] sm:$0xff]  ;;  %v2389_v48 = vld [vmem:[#allocation11_spill] sm:$0xff]  ;;  %v690_v0 = vand.u32 2147483647, %v1616_v39  ;;  %v2417_v33 = vsub.f32 %v2385_v2, %v2384_v17 }
  0x7a   :  { %v1705_v7 = vadd.f32 %v623_v9, %v2375_v36  ;;  %v2388_v19 = vld [vmem:[#allocation18_spill] sm:$0xff]  ;;  %v2390_v9 = vld [vmem:[#allocation19_spill] sm:$0xff]  ;;  %v2392_v30 = vld [vmem:[#allocation21_spill] sm:$0xff]  ;;  %v692_v38 = vand.u32 2147483647, %v1622_v37  ;;  %v2418_v15 = vsub.f32 %v2387_v14, %v2386_v32 }
  0x7b   :  { %v1710_v43 = vadd.f32 %v624_v6, %v2378_v3  ;;  %v2393_v25 = vld [vmem:[#allocation13_spill] sm:$0xff]  ;;  %v2396_v36 = vld [vmem:[#allocation23_spill] sm:$0xff]  ;;  %v2401_v18 = vld [vmem:[#allocation26_spill] sm:$0xff]  ;;  %v721_v8 = vand.u32 2147483647, %v657_v53  ;;  %v2420_v53 = vsub.f32 %v2382_v45, %v2389_v48  ;;  %v2423_v14 = vsub.f32 %v2388_v19, %v2392_v30 }
  0x7c   :  { %v2399_v6 = vld [vmem:[#allocation25_spill] sm:$0xff]  ;;  %v2403_v55 = vld [vmem:[#allocation39_spill] sm:$0xff]  ;;  %v2405_v1 = vld [vmem:[#allocation34_spill] sm:$0xff]  ;;  %v723_v52 = vand.u32 2147483647, %v2417_v33  ;;  %v2422_v33 = vsub.f32 %v2386_v32, %v2391_v62  ;;  %v2429_v32 = vsub.f32 %v2392_v30, %v2396_v36 }
  0x7d   :  { %2379 = vst [vmem:[#allocation46_spill] sm:$0xff] %v1710_v43  ;;  %v2402_v26 = vld [vmem:[#allocation33_spill] sm:$0xff]  ;;  %v2406_v44 = vld [vmem:[#allocation35_spill] sm:$0xff]  ;;  %v2407_v49 = vld [vmem:[#allocation40_spill] sm:$0xff] }
  0x7e   :  { %v2404_v20 = vld [vmem:[#allocation45_spill] sm:$0xff]  ;;  %v2410_v63 = vld [vmem:[#allocation50_spill] sm:$0xff]  ;;  %v2413_v40 = vld [vmem:[#allocation75_spill] sm:$0xff]  ;;  %v728_v2 = vand.u32 2147483647, %v2422_v33  ;;  %v755_v33 = vadd.f32 %v723_v52, %v691_v60 }
  0x7f   :  { %v2408_v50 = vld [vmem:[#allocation41_spill] sm:$0xff]  ;;  %v683_v21 = vsub.f32 %v2406_v44, %v2410_v63  ;;  %v2412_v35 = vld [vmem:[#allocation74_spill] sm:$0xff]  ;;  %v2414_v29 = vld [vmem:[#allocation76_spill] sm:$0xff] }
  0x80   :  { %v681_v57 = vsub.f32 %v2404_v20, %v2408_v50  ;;  %v2409_v10 = vld [vmem:[#allocation49_spill] sm:$0xff]  ;;  %v685_v37 = vsub.f32 %v2408_v50, %v2412_v35  ;;  %v687_v4 = vsub.f32 %v2410_v63, %v2414_v29  ;;  %v724_v63 = vand.u32 2147483647, %v2418_v15  ;;  %787 = vst.msk [vmem:[%s2062_s1 + $0x10] sm:$0xff] %vm198_vm0, %v755_v33 }
  0x81   :  { %v682_v39 = vsub.f32 %v2405_v1, %v2409_v10  ;;  %v2411_v41 = vld [vmem:[#allocation73_spill] sm:$0xff]  ;;  %v686_v3 = vsub.f32 %v2409_v10, %v2413_v40  ;;  %v2416_v10 = vsub.f32 %v2383_v16, %v2382_v45  ;;  %v2419_v29 = vsub.f32 %v2380_v34, %v2388_v19  ;;  %v2425_v45 = vld [vmem:[#allocation22_spill] sm:$0xff]  ;;  %v2430_v19 = vld [vmem:[#allocation20_spill] sm:$0xff] }
  0x82   :  { %v684_v22 = vsub.f32 %v2407_v49, %v2411_v41  ;;  %v2415_v42 = vld [vmem:[#allocation77_spill] sm:$0xff]  ;;  %v729_v15 = vand.u32 2147483647, %v2423_v14  ;;  %v2424_v34 = vsub.f32 %v2389_v48, %v2393_v25  ;;  %v2431_v48 = vsub.f32 %v2393_v25, %v2430_v19 }
  0x83   :  { %v688_v47 = vsub.f32 %v2411_v41, %v2415_v42  ;;  %v722_v40 = vand.u32 2147483647, %v2416_v10  ;;  %v725_v35 = vand.u32 2147483647, %v2419_v29  ;;  %v726_v42 = vand.u32 2147483647, %v2420_v53 }
  0x84   :  { %v2421_v41 = vsub.f32 %v2384_v17, %v2390_v9  ;;  %v753_v10 = vadd.f32 %v721_v8, %v689_v12  ;;  %v730_v29 = vand.u32 2147483647, %v2424_v34  ;;  %v2426_v53 = vsub.f32 %v2390_v9, %v2425_v45  ;;  %v2427_v17 = vld [vmem:[#allocation16_spill] sm:$0xff]  ;;  %v2435_v52 = vld [vmem:[#allocation29_spill] sm:$0xff] }
  0x85   :  { %v754_v50 = vadd.f32 %v722_v40, %v690_v0  ;;  %v2428_v8 = vsub.f32 %v2391_v62, %v2427_v17  ;;  %v734_v0 = vand.u32 2147483647, %v2431_v48  ;;  %v2432_v9 = vld [vmem:[#allocation24_spill] sm:$0xff]  ;;  %v2434_v62 = vsub.f32 %v2427_v17, %v2399_v6  ;;  %v2439_v17 = vld [vmem:[#allocation27_spill] sm:$0xff] }
  0x86   :  { %v727_v16 = vand.u32 2147483647, %v2421_v41  ;;  %v731_v43 = vand.u32 2147483647, %v2426_v53  ;;  %v733_v41 = vand.u32 2147483647, %v2429_v32  ;;  %v2433_v40 = vsub.f32 %v2425_v45, %v2432_v9 }
  0x87   :  { %v732_v12 = vand.u32 2147483647, %v2428_v8  ;;  %785 = vst.msk [vmem:[%s2062_s1] sm:$0xff] %vm198_vm0, %v753_v10  ;;  %v736_v34 = vand.u32 2147483647, %v2434_v62  ;;  %v756_v30 = vadd.f32 %v724_v63, %v692_v38  ;;  %786 = vst.msk [vmem:[%s2062_s1 + $0x8] sm:$0xff] %vm198_vm0, %v754_v50  ;;  %v2436_v60 = vsub.f32 %v2396_v36, %v2435_v52 }
  0x88   :  { %v735_v14 = vand.u32 2147483647, %v2433_v40  ;;  %v2437_v25 = vsub.f32 %v2430_v19, %v2401_v18  ;;  %v2438_v45 = vsub.f32 %v2432_v9, %v2402_v26  ;;  %v2440_v32 = vand.u32 2147483647, %v2439_v17  ;;  %v2454_v17 = vld [vmem:[#allocation31_spill] sm:$0xff] }
  0x89   :  { %v737_v10 = vand.u32 2147483647, %v2436_v60  ;;  %v2441_v36 = vsub.f32 %v2399_v6, %v2403_v55  ;;  %v2442_v63 = vsub.f32 %v2435_v52, %v2404_v20  ;;  %v2443_v48 = vsub.f32 %v2401_v18, %v2405_v1  ;;  %788 = vst.msk [vmem:[%s2062_s1 + $0x18] sm:$0xff] %vm198_vm0, %v756_v30  ;;  %v2448_v60 = vld [vmem:[#allocation28_spill] sm:$0xff] }
  0x8a   :  { %v738_v53 = vand.u32 2147483647, %v2437_v25  ;;  %v739_v8 = vand.u32 2147483647, %v2438_v45  ;;  %v757_v38 = vadd.f32 %v725_v35, %v2440_v32  ;;  %v2444_v40 = vand.u32 2147483647, %v1628_v5 }
  0x8b   :  { %v740_v50 = vand.u32 2147483647, %v2441_v36  ;;  %v741_v19 = vand.u32 2147483647, %v2442_v63  ;;  %v742_v9 = vand.u32 2147483647, %v2443_v48  ;;  %v2445_v6 = vsub.f32 %v2402_v26, %v2406_v44 }
  0x8c   :  { %v758_v35 = vadd.f32 %v726_v42, %v2444_v40  ;;  %v2446_v20 = vsub.f32 %v2403_v55, %v2407_v49  ;;  %v745_v52 = vand.u32 2147483647, %v681_v57  ;;  %v2447_v18 = vand.u32 2147483647, %v1631_v46  ;;  %789 = vst.msk [vmem:[%s2062_s1 + $0x20] sm:$0xff] %vm198_vm0, %v757_v38  ;;  %v2459_v38 = vld [vmem:[#allocation36_spill] sm:$0xff] }
  0x8d   :  { %v743_v33 = vand.u32 2147483647, %v2445_v6  ;;  %v746_v5 = vand.u32 2147483647, %v682_v39  ;;  %v747_v42 = vand.u32 2147483647, %v683_v21 }
  0x8e   :  { %v744_v62 = vand.u32 2147483647, %v2446_v20  ;;  %v759_v1 = vadd.f32 %v727_v16, %v2447_v18  ;;  %v748_v30 = vand.u32 2147483647, %v684_v22  ;;  %v2449_v25 = vand.u32 2147483647, %v2448_v60 }
  0x8f   :  { %790 = vst.msk [vmem:[%s2062_s1 + $0x28] sm:$0xff] %vm198_vm0, %v758_v35  ;;  %v749_v55 = vand.u32 2147483647, %v685_v37  ;;  %v750_v49 = vand.u32 2147483647, %v686_v3  ;;  %v2452_v16 = vld [vmem:[#allocation30_spill] sm:$0xff] }
  0x90   :  { %v760_v26 = vadd.f32 %v728_v2, %v2449_v25  ;;  %v751_v46 = vand.u32 2147483647, %v687_v4  ;;  %v2450_v57 = vand.u32 2147483647, %v1637_v23  ;;  %791 = vst.msk [vmem:[%s2062_s1 + $0x30] sm:$0xff] %vm198_vm0, %v759_v1  ;;  %v2457_v3 = vld [vmem:[#allocation32_spill] sm:$0xff] }
  0x91   :  { %v752_v21 = vand.u32 2147483647, %v688_v47  ;;  %v2451_v22 = vand.u32 2147483647, %v1640_v27  ;;  %v2453_v2 = vand.u32 2147483647, %v2452_v16 }
  0x92   :  { %v761_v44 = vadd.f32 %v729_v15, %v2450_v57  ;;  %v2455_v32 = vand.u32 2147483647, %v2454_v17  ;;  %792 = vst.msk [vmem:[%s2062_s1 + $0x38] sm:$0xff] %vm198_vm0, %v760_v26  ;;  %v2456_v23 = vand.u32 2147483647, %v1649_v56  ;;  %v2464_v40 = vld [vmem:[#allocation38_spill] sm:$0xff] }
  0x93   :  { %v762_v39 = vadd.f32 %v730_v29, %v2451_v22  ;;  %v763_v45 = vadd.f32 %v731_v43, %v2453_v2  ;;  %v2458_v15 = vand.u32 2147483647, %v2457_v3  ;;  %v2460_v27 = vand.u32 2147483647, %v2459_v38  ;;  %v2467_v6 = vld [vmem:[#allocation42_spill] sm:$0xff] }
  0x94   :  { %v764_v37 = vadd.f32 %v732_v12, %v2455_v32  ;;  %v765_v4 = vadd.f32 %v733_v41, %v2456_v23  ;;  %v2461_v36 = vand.u32 2147483647, %v1658_v24  ;;  %793 = vst.msk [vmem:[%s2062_s1 + $0x40] sm:$0xff] %vm198_vm0, %v761_v44  ;;  %v2462_v12 = vld [vmem:[#allocation37_spill] sm:$0xff]  ;;  %v2465_v56 = vand.u32 2147483647, %v2464_v40 }
  0x95   :  { %v766_v47 = vadd.f32 %v734_v0, %v2458_v15  ;;  %v767_v29 = vadd.f32 %v735_v14, %v2460_v27  ;;  %v2463_v63 = vand.u32 2147483647, %v2462_v12  ;;  %v2466_v35 = vand.u32 2147483647, %v1667_v61  ;;  %794 = vst.msk [vmem:[%s2062_s1 + $0x48] sm:$0xff] %vm198_vm0, %v762_v39  ;;  %795 = vst.msk [vmem:[%s2062_s1 + $0x50] sm:$0xff] %vm198_vm0, %v763_v45 }
  0x96   :  { %v768_v43 = vadd.f32 %v736_v34, %v2461_v36  ;;  %v770_v41 = vadd.f32 %v738_v53, %v2465_v56  ;;  %v2468_v20 = vand.u32 2147483647, %v2467_v6  ;;  %796 = vst.msk [vmem:[%s2062_s1 + $0x58] sm:$0xff] %vm198_vm0, %v764_v37  ;;  %v2469_v24 = vld [vmem:[#allocation43_spill] sm:$0xff]  ;;  %v2474_v1 = vand.u32 2147483647, %v1682_v31 }
  0x97   :  { %v769_v48 = vadd.f32 %v737_v10, %v2463_v63  ;;  %v771_v0 = vadd.f32 %v739_v8, %v2466_v35  ;;  %v2470_v61 = vand.u32 2147483647, %v2469_v24  ;;  %v2471_v10 = vand.u32 2147483647, %v1676_v54  ;;  %v2472_v8 = vld [vmem:[#allocation44_spill] sm:$0xff]  ;;  %797 = vst.msk [vmem:[%s2062_s1 + $0x60] sm:$0xff] %vm198_vm0, %v765_v4 }
  0x98   :  { %v772_v14 = vadd.f32 %v740_v50, %v2468_v20  ;;  %v2473_v50 = vand.u32 2147483647, %v2472_v8  ;;  %v776_v60 = vadd.f32 %v744_v62, %v2474_v1  ;;  %798 = vst.msk [vmem:[%s2062_s1 + $0x68] sm:$0xff] %vm198_vm0, %v766_v47  ;;  %799 = vst.msk [vmem:[%s2062_s1 + $0x70] sm:$0xff] %vm198_vm0, %v767_v29  ;;  %v2475_v54 = vand.u32 2147483647, %v1685_v51 }
  0x99   :  { %v773_v34 = vadd.f32 %v741_v19, %v2470_v61  ;;  %v774_v53 = vadd.f32 %v742_v9, %v2471_v10  ;;  %800 = vst.msk [vmem:[%s2062_s1 + $0x78] sm:$0xff] %vm198_vm0, %v768_v43  ;;  %v2476_v19 = vand.u32 2147483647, %v1688_v28  ;;  %v2478_v25 = vand.u32 2147483647, %v1694_v11  ;;  %801 = vst.msk [vmem:[%s2062_s1 + $0x80] sm:$0xff] %vm198_vm0, %v769_v48 }
  0x9a   :  { %v775_v18 = vadd.f32 %v743_v33, %v2473_v50  ;;  %v777_v31 = vadd.f32 %v745_v52, %v2475_v54  ;;  %v2477_v33 = vand.u32 2147483647, %v1691_v58  ;;  %802 = vst.msk [vmem:[%s2062_s1 + $0x88] sm:$0xff] %vm198_vm0, %v770_v41  ;;  %803 = vst.msk [vmem:[%s2062_s1 + $0x90] sm:$0xff] %vm198_vm0, %v771_v0  ;;  %v2479_v51 = vand.u32 2147483647, %v1697_v59 }
  0x9b   :  { %v778_v9 = vadd.f32 %v746_v5, %v2476_v19  ;;  %v780_v26 = vadd.f32 %v748_v30, %v2478_v25  ;;  %804 = vst.msk [vmem:[%s2062_s1 + $0x98] sm:$0xff] %vm198_vm0, %v772_v14  ;;  %v2480_v58 = vand.u32 2147483647, %v1700_v13  ;;  %v2481_v52 = vand.u32 2147483647, %v1705_v7  ;;  %805 = vst.msk [vmem:[%s2062_s1 + $0xa0] sm:$0xff] %vm198_vm0, %v773_v34 }
  0x9c   :  { %v779_v62 = vadd.f32 %v747_v42, %v2477_v33  ;;  %v781_v28 = vadd.f32 %v749_v55, %v2479_v51  ;;  %v2482_v42 = vld [vmem:[#allocation46_spill] sm:$0xff]  ;;  %806 = vst.msk [vmem:[%s2062_s1 + $0xa8] sm:$0xff] %vm198_vm0, %v774_v53  ;;  %807 = vst.msk [vmem:[%s2062_s1 + $0xb0] sm:$0xff] %vm198_vm0, %v775_v18 }
  0x9d   :  { %v782_v11 = vadd.f32 %v750_v49, %v2480_v58  ;;  %v783_v5 = vadd.f32 %v751_v46, %v2481_v52  ;;  %v2483_v30 = vand.u32 2147483647, %v2482_v42  ;;  %808 = vst.msk [vmem:[%s2062_s1 + $0xb8] sm:$0xff] %vm198_vm0, %v776_v60  ;;  %809 = vst.msk [vmem:[%s2062_s1 + $0xc0] sm:$0xff] %vm198_vm0, %v777_v31 }
  0x9e   :  { %810 = vst.msk [vmem:[%s2062_s1 + $0xc8] sm:$0xff] %vm198_vm0, %v778_v9  ;;  %811 = vst.msk [vmem:[%s2062_s1 + $0xd0] sm:$0xff] %vm198_vm0, %v779_v62 }
  0x9f   :  { %v784_v57 = vadd.f32 %v752_v21, %v2483_v30  ;;  %812 = vst.msk [vmem:[%s2062_s1 + $0xd8] sm:$0xff] %vm198_vm0, %v780_v26  ;;  %813 = vst.msk [vmem:[%s2062_s1 + $0xe0] sm:$0xff] %vm198_vm0, %v781_v28 }
  0xa0   :  { %814 = vst.msk [vmem:[%s2062_s1 + $0xe8] sm:$0xff] %vm198_vm0, %v782_v11  ;;  %815 = vst.msk [vmem:[%s2062_s1 + $0xf0] sm:$0xff] %vm198_vm0, %v783_v5 }
  0xa1   :  { %816 = vst.msk [vmem:[%s2062_s1 + $0xf8] sm:$0xff] %vm198_vm0, %v784_v57 }

</bundles_post_ra>
